<compile_context>
chip_gen: v5e
topology: v5e:2x2
jax: 0.10.0
libtpu: 0.0.40
codegen_flags: <defaults>
</compile_context>

<pallas_src>
import functools

import jax
import jax.numpy as jnp
from jax.experimental import pallas as pl
from jax.experimental.pallas import tpu as pltpu


CONT_DIM = 5
CAT_DIM = 30
EMBED_DIM = 10
HIDDEN_DIM = 256
OUTPUT_DIM = 24

TOTAL_IN = CONT_DIM + CAT_DIM     # 35 : fused first-layer K dimension
IN_PAD = 64                       # MXU-friendly padded K for the fused fc1
OUT_PAD = 128                     # lane-dense padded output width
MAX_TILE_B = 1024                 # max batch rows per grid step
ROW_ALIGN = 16                    # bf16 sublane packing: tile rows multiple of 16


def _round_up(n, m):
    return ((n + m - 1) // m) * m


def _pick_tile_b(b, max_tile_b):
    """Largest aligned tile <= max_tile_b, capped at ceil(B/2) so mid/large
    batches keep >=2 parallel grid steps (v7x megacore sharding)."""
    b_aligned = _round_up(b, ROW_ALIGN)
    half = _round_up((b_aligned + 1) // 2, ROW_ALIGN)
    return max(ROW_ALIGN, min(max_tile_b, half))


def _bf16_epilogue_ok():
    """bf16 elementwise epilogue only on chips with a bf16 VPU (v6e / v7x)."""
    try:
        kind = jax.devices()[0].device_kind.lower()
    except Exception:  # pragma: no cover - e.g. no devices during AOT tracing
        return False
    return any(tag in kind for tag in ("v6", "v7", "tpu7"))


def _mlp_kernel(x_ref,
                w1_ref, b1_ref,
                w2_ref, b2_ref,
                w3_ref, b3_ref,
                w4_ref, b4_ref,
                w5_ref, b5_ref,
                w6_ref, b6_ref,
                w7_ref, b7_ref,
                out_ref):
    f32 = jnp.float32

    # fc1 on the fused, zero-padded [x_cont | x_cat | 0] input (embedding folded
    # into W1).  Bias dtype == epilogue dtype (f32 on v5e / validation path,
    # bf16 on v6e/v7x): cast the f32 MXU accumulator once, then bias-add + ReLU
    # and the inter-layer activation h stay in that dtype.
    acc = jnp.dot(x_ref[...], w1_ref[...], preferred_element_type=f32)
    h = jnp.maximum(acc.astype(b1_ref.dtype) + b1_ref[...], 0.0)
    # dropout(p=0.25) -> identity at inference time.
    # TODO(synk): training-mode dropout (stateful PRNG masking) not implemented.

    for w_ref, b_ref in ((w2_ref, b2_ref), (w3_ref, b3_ref), (w4_ref, b4_ref),
                         (w5_ref, b5_ref), (w6_ref, b6_ref)):
        acc = jnp.dot(h.astype(w_ref.dtype), w_ref[...],
                      preferred_element_type=f32)
        h = jnp.maximum(acc.astype(b_ref.dtype) + b_ref[...], 0.0)

    # Final layer: 128-lane padded output -> unmasked, lane-dense stores.
    acc = jnp.dot(h.astype(w7_ref.dtype), w7_ref[...], preferred_element_type=f32)
    out_ref[...] = (acc.astype(b7_ref.dtype) + b7_ref[...]).astype(out_ref.dtype)


@functools.partial(
    jax.jit, static_argnames=("compute_dtype", "epilogue_dtype", "max_tile_b"))
def _forward(x_cont, x_cat, params, compute_dtype, epilogue_dtype, max_tile_b):
    B = x_cont.shape[0]

    # ---- weight prep (traced once under jit; constant-folded by XLA) --------
    w1 = params["w1"].astype(jnp.float32)            # (15, 256)
    w1c = w1[:CONT_DIM]                              # (5, 256)
    w1e = w1[CONT_DIM:]                              # (10, 256)
    # emb @ W1e == x_cat @ (We @ W1e): fold the embedding into fc1 (offline f32;
    # introduces one extra rounding vs the reference two-step path -- intentional).
    w1_fused = jnp.concatenate(
        [w1c, params["we"].astype(jnp.float32) @ w1e], axis=0)        # (35, 256)
    w1_fused = jnp.pad(w1_fused, ((0, IN_PAD - TOTAL_IN), (0, 0)))    # (64, 256)

    w7p = jnp.pad(params["w7"], ((0, 0), (0, OUT_PAD - OUTPUT_DIM)))  # (256,128)
    b7p = jnp.pad(params["b7"], ((0, 0), (0, OUT_PAD - OUTPUT_DIM)))  # (1, 128)

    mats = [w1_fused, params["w2"], params["w3"], params["w4"],
            params["w5"], params["w6"], w7p]
    biases = [params["b1"], params["b2"], params["b3"], params["b4"],
              params["b5"], params["b6"], b7p]
    mats = [m.astype(compute_dtype) for m in mats]        # MXU operand dtype
    biases = [b.astype(epilogue_dtype) for b in biases]   # bias-add / ReLU dtype

    weights = []
    for m, b in zip(mats, biases):
        weights += [m, b]

    # ---- input prep / batch tiling ------------------------------------------
    tile_b = _pick_tile_b(B, max_tile_b)
    Bp = _round_up(B, tile_b)
    x = jnp.concatenate([x_cont, x_cat], axis=1)                       # (B, 35)
    # Padding rows/cols are zeros: pad rows compute bias+ReLU garbage (finite,
    # sliced off below); pad K columns contribute exactly zero.
    x = jnp.pad(x, ((0, Bp - B), (0, IN_PAD - TOTAL_IN))).astype(compute_dtype)

    out_dtype = jnp.float32 if compute_dtype == jnp.float32 else jnp.bfloat16

    grid = (Bp // tile_b,)
    in_specs = ([pl.BlockSpec((tile_b, IN_PAD), lambda i: (i, 0))]
                + [pl.BlockSpec(w.shape, lambda i: (0, 0)) for w in weights])

    flops = 2 * Bp * (IN_PAD * HIDDEN_DIM
                      + 5 * HIDDEN_DIM * HIDDEN_DIM
                      + HIDDEN_DIM * OUT_PAD)
    bytes_accessed = (sum(int(w.size) * w.dtype.itemsize for w in weights)
                      + int(x.size) * x.dtype.itemsize
                      + Bp * OUT_PAD * jnp.dtype(out_dtype).itemsize)

    out = pl.pallas_call(
        _mlp_kernel,
        out_shape=jax.ShapeDtypeStruct((Bp, OUT_PAD), out_dtype),
        grid_spec=pltpu.PrefetchScalarGridSpec(
            num_scalar_prefetch=0,
            grid=grid,
            in_specs=in_specs,
            out_specs=pl.BlockSpec((tile_b, OUT_PAD), lambda i: (i, 0)),
        ),
        compiler_params=pltpu.CompilerParams(
            dimension_semantics=("parallel",)),
        cost_estimate=pl.CostEstimate(
            flops=flops, transcendentals=0, bytes_accessed=bytes_accessed),
    )(x, *weights)

    return out[:B, :OUTPUT_DIM].astype(jnp.float32)


def traffic_predictor_onehot(x_cont, x_cat, params,
                             compute_dtype=jnp.bfloat16,
                             epilogue_dtype=None,
                             max_tile_b=MAX_TILE_B):
    """Inference forward.  params: weights stored (in, out); biases (1, out)."""
    if epilogue_dtype is None:
        if compute_dtype == jnp.float32:
            epilogue_dtype = jnp.float32          # exactness / validation path
        else:
            # bf16 bias/ReLU/activation only where the VPU supports bf16
            # (v6e / v7x); v5e keeps the f32 epilogue (MXU-bound there anyway).
            epilogue_dtype = jnp.bfloat16 if _bf16_epilogue_ok() else jnp.float32
    return _forward(x_cont, x_cat, params, compute_dtype, epilogue_dtype,
                    max_tile_b)


def init_params(key):
    """Deterministic synthetic parameter init (shapes from the PyTorch module)."""
    ks = jax.random.split(key, 16)
    s = 0.05

    def lin(k, fan_in, fan_out):
        return jax.random.normal(k, (fan_in, fan_out), jnp.float32) * s

    def bias(k, fan_out):
        return jax.random.normal(k, (1, fan_out), jnp.float32) * s

    total_in = CONT_DIM + EMBED_DIM
    return {
        "we": lin(ks[0], CAT_DIM, EMBED_DIM),
        "w1": lin(ks[1], total_in, HIDDEN_DIM), "b1": bias(ks[2], HIDDEN_DIM),
        "w2": lin(ks[3], HIDDEN_DIM, HIDDEN_DIM), "b2": bias(ks[4], HIDDEN_DIM),
        "w3": lin(ks[5], HIDDEN_DIM, HIDDEN_DIM), "b3": bias(ks[6], HIDDEN_DIM),
        "w4": lin(ks[7], HIDDEN_DIM, HIDDEN_DIM), "b4": bias(ks[8], HIDDEN_DIM),
        "w5": lin(ks[9], HIDDEN_DIM, HIDDEN_DIM), "b5": bias(ks[10], HIDDEN_DIM),
        "w6": lin(ks[11], HIDDEN_DIM, HIDDEN_DIM), "b6": bias(ks[12], HIDDEN_DIM),
        "w7": lin(ks[13], HIDDEN_DIM, OUTPUT_DIM), "b7": bias(ks[14], OUTPUT_DIM),
    }


def reference_forward(x_cont, x_cat, p):
    """Pure-JAX f32 reference mirroring the PyTorch forward (eval mode)."""
    emb = x_cat @ p["we"]
    x = jnp.concatenate([x_cont, emb], axis=1)
    h = jax.nn.relu(x @ p["w1"] + p["b1"])
    for i in (2, 3, 4, 5, 6):
        h = jax.nn.relu(h @ p[f"w{i}"] + p[f"b{i}"])
    return h @ p["w7"] + p["b7"]


if __name__ == "__main__":
    key = jax.random.PRNGKey(0)
    k_params, k_cont, k_cat = jax.random.split(key, 3)

    params = init_params(k_params)

    # ---- small batch (not a multiple of 16 -> exercises row padding) --------
    B = 12
    x_cont = jax.random.normal(k_cont, (B, CONT_DIM), jnp.float32)
    cat_idx = jax.random.randint(k_cat, (B,), 0, CAT_DIM)
    x_cat = jax.nn.one_hot(cat_idx, CAT_DIM, dtype=jnp.float32)

    ref = reference_forward(x_cont, x_cat, params)

    # f32 compute path: near-exact check (tolerance loosened vs 1e-4 since the
    # default TPU f32 matmul precision varies across generations).
    out_f32 = jax.block_until_ready(
        traffic_predictor_onehot(x_cont, x_cat, params,
                                 compute_dtype=jnp.float32))
    assert out_f32.shape == (B, OUTPUT_DIM), out_f32.shape
    assert jnp.allclose(out_f32, ref, atol=1e-3, rtol=1e-3), (
        float(jnp.max(jnp.abs(out_f32 - ref))))

    # Default fast path: bf16 MXU operands, f32 accumulation, bf16 epilogue on
    # v6e/v7x (f32 epilogue on v5e), bf16 padded output.
    out_fast = jax.block_until_ready(
        traffic_predictor_onehot(x_cont, x_cat, params))
    assert out_fast.shape == (B, OUTPUT_DIM), out_fast.shape
    assert jnp.allclose(out_fast, ref, atol=3e-2, rtol=3e-2), (
        float(jnp.max(jnp.abs(out_fast - ref))))

    # ---- mid batch: 512-row tile, 2 parallel grid steps (megacore on v7x) ----
    Bb = 1000
    kb1, kb2 = jax.random.split(jax.random.PRNGKey(1))
    xb_cont = jax.random.normal(kb1, (Bb, CONT_DIM), jnp.float32)
    xb_cat = jax.nn.one_hot(jax.random.randint(kb2, (Bb,), 0, CAT_DIM),
                            CAT_DIM, dtype=jnp.float32)
    out_mid = jax.block_until_ready(
        traffic_predictor_onehot(xb_cont, xb_cat, params))
    ref_mid = reference_forward(xb_cont, xb_cat, params)
    assert out_mid.shape == (Bb, OUTPUT_DIM), out_mid.shape
    assert jnp.allclose(out_mid, ref_mid, atol=3e-2, rtol=3e-2), (
        float(jnp.max(jnp.abs(out_mid - ref_mid))))

    # ---- larger batch: exercises the full 1024-row tile + multi-step grid ---
    Bc = 2500
    kc1, kc2 = jax.random.split(jax.random.PRNGKey(2))
    xc_cont = jax.random.normal(kc1, (Bc, CONT_DIM), jnp.float32)
    xc_cat = jax.nn.one_hot(jax.random.randint(kc2, (Bc,), 0, CAT_DIM),
                            CAT_DIM, dtype=jnp.float32)
    out_big = jax.block_until_ready(
        traffic_predictor_onehot(xc_cont, xc_cat, params))
    ref_big = reference_forward(xc_cont, xc_cat, params)
    assert out_big.shape == (Bc, OUTPUT_DIM), out_big.shape
    assert jnp.allclose(out_big, ref_big, atol=3e-2, rtol=3e-2), (
        float(jnp.max(jnp.abs(out_big - ref_big))))

    print("KERNEL_OK")
</pallas_src>

<mosaic_0001>
module attributes {stable_mosaic.version = 11 : i64} {
  func.func @_mlp_kernel(%arg0: i32, %arg1: memref<16x64xf32, #tpu.memory_space<vmem>>, %arg2: memref<64x256xf32, #tpu.memory_space<vmem>>, %arg3: memref<1x256xf32, #tpu.memory_space<vmem>>, %arg4: memref<256x256xf32, #tpu.memory_space<vmem>>, %arg5: memref<1x256xf32, #tpu.memory_space<vmem>>, %arg6: memref<256x256xf32, #tpu.memory_space<vmem>>, %arg7: memref<1x256xf32, #tpu.memory_space<vmem>>, %arg8: memref<256x256xf32, #tpu.memory_space<vmem>>, %arg9: memref<1x256xf32, #tpu.memory_space<vmem>>, %arg10: memref<256x256xf32, #tpu.memory_space<vmem>>, %arg11: memref<1x256xf32, #tpu.memory_space<vmem>>, %arg12: memref<256x256xf32, #tpu.memory_space<vmem>>, %arg13: memref<1x256xf32, #tpu.memory_space<vmem>>, %arg14: memref<256x128xf32, #tpu.memory_space<vmem>>, %arg15: memref<1x128xf32, #tpu.memory_space<vmem>>, %arg16: memref<16x128xf32, #tpu.memory_space<vmem>>) attributes {dimension_semantics = [#tpu.dimension_semantics<parallel>], iteration_bounds = array<i64: 1>, scalar_prefetch = 0 : i64, scratch_operands = 0 : i64, tpu.core_type = #tpu.core_type<tc>, window_params = [{transform_indices = @transform_0, window_bounds = array<i64: 16, 64>}, {pipeline_mode = #tpu.pipeline_mode<synchronous>, transform_indices = @transform_1, window_bounds = array<i64: 64, 256>}, {pipeline_mode = #tpu.pipeline_mode<synchronous>, transform_indices = @transform_2, window_bounds = array<i64: 1, 256>}, {pipeline_mode = #tpu.pipeline_mode<synchronous>, transform_indices = @transform_3, window_bounds = array<i64: 256, 256>}, {pipeline_mode = #tpu.pipeline_mode<synchronous>, transform_indices = @transform_4, window_bounds = array<i64: 1, 256>}, {pipeline_mode = #tpu.pipeline_mode<synchronous>, transform_indices = @transform_5, window_bounds = array<i64: 256, 256>}, {pipeline_mode = #tpu.pipeline_mode<synchronous>, transform_indices = @transform_6, window_bounds = array<i64: 1, 256>}, {pipeline_mode = #tpu.pipeline_mode<synchronous>, transform_indices = @transform_7, window_bounds = array<i64: 256, 256>}, {pipeline_mode = #tpu.pipeline_mode<synchronous>, transform_indices = @transform_8, window_bounds = array<i64: 1, 256>}, {pipeline_mode = #tpu.pipeline_mode<synchronous>, transform_indices = @transform_9, window_bounds = array<i64: 256, 256>}, {pipeline_mode = #tpu.pipeline_mode<synchronous>, transform_indices = @transform_10, window_bounds = array<i64: 1, 256>}, {pipeline_mode = #tpu.pipeline_mode<synchronous>, transform_indices = @transform_11, window_bounds = array<i64: 256, 256>}, {pipeline_mode = #tpu.pipeline_mode<synchronous>, transform_indices = @transform_12, window_bounds = array<i64: 1, 256>}, {pipeline_mode = #tpu.pipeline_mode<synchronous>, transform_indices = @transform_13, window_bounds = array<i64: 256, 128>}, {pipeline_mode = #tpu.pipeline_mode<synchronous>, transform_indices = @transform_14, window_bounds = array<i64: 1, 128>}, {transform_indices = @transform_15, window_bounds = array<i64: 16, 128>}]} {
    %c0 = arith.constant 0 : index
    %c0_0 = arith.constant 0 : index
    %0 = vector.load %arg1[%c0, %c0_0] : memref<16x64xf32, #tpu.memory_space<vmem>>, vector<16x64xf32>
    %c0_1 = arith.constant 0 : index
    %c0_2 = arith.constant 0 : index
    %1 = vector.load %arg2[%c0_1, %c0_2] : memref<64x256xf32, #tpu.memory_space<vmem>>, vector<64x256xf32>
    %cst = arith.constant dense<0.000000e+00> : vector<16x256xf32>
    %2 = tpu.matmul %0, %1, %cst {dimension_numbers = #tpu.dot_dimension_numbers<[1], [0], [0], [1], [0, 0, 1, 1], [], []>} : vector<16x64xf32>, vector<64x256xf32>, vector<16x256xf32> -> vector<16x256xf32>
    %c0_3 = arith.constant 0 : index
    %c0_4 = arith.constant 0 : index
    %3 = vector.load %arg3[%c0_3, %c0_4] : memref<1x256xf32, #tpu.memory_space<vmem>>, vector<1x256xf32>
    %4 = vector.broadcast %3 : vector<1x256xf32> to vector<16x256xf32>
    %5 = arith.addf %2, %4 : vector<16x256xf32>
    %cst_5 = arith.constant 0.000000e+00 : f32
    %6 = vector.broadcast %cst_5 : f32 to vector<16x256xf32>
    %7 = arith.maximumf %5, %6 : vector<16x256xf32>
    %c0_6 = arith.constant 0 : index
    %c0_7 = arith.constant 0 : index
    %8 = vector.load %arg4[%c0_6, %c0_7] : memref<256x256xf32, #tpu.memory_space<vmem>>, vector<256x256xf32>
    %cst_8 = arith.constant dense<0.000000e+00> : vector<16x256xf32>
    %9 = tpu.matmul %7, %8, %cst_8 {dimension_numbers = #tpu.dot_dimension_numbers<[1], [0], [0], [1], [0, 0, 1, 1], [], []>} : vector<16x256xf32>, vector<256x256xf32>, vector<16x256xf32> -> vector<16x256xf32>
    %c0_9 = arith.constant 0 : index
    %c0_10 = arith.constant 0 : index
    %10 = vector.load %arg5[%c0_9, %c0_10] : memref<1x256xf32, #tpu.memory_space<vmem>>, vector<1x256xf32>
    %11 = vector.broadcast %10 : vector<1x256xf32> to vector<16x256xf32>
    %12 = arith.addf %9, %11 : vector<16x256xf32>
    %cst_11 = arith.constant 0.000000e+00 : f32
    %13 = vector.broadcast %cst_11 : f32 to vector<16x256xf32>
    %14 = arith.maximumf %12, %13 : vector<16x256xf32>
    %c0_12 = arith.constant 0 : index
    %c0_13 = arith.constant 0 : index
    %15 = vector.load %arg6[%c0_12, %c0_13] : memref<256x256xf32, #tpu.memory_space<vmem>>, vector<256x256xf32>
    %cst_14 = arith.constant dense<0.000000e+00> : vector<16x256xf32>
    %16 = tpu.matmul %14, %15, %cst_14 {dimension_numbers = #tpu.dot_dimension_numbers<[1], [0], [0], [1], [0, 0, 1, 1], [], []>} : vector<16x256xf32>, vector<256x256xf32>, vector<16x256xf32> -> vector<16x256xf32>
    %c0_15 = arith.constant 0 : index
    %c0_16 = arith.constant 0 : index
    %17 = vector.load %arg7[%c0_15, %c0_16] : memref<1x256xf32, #tpu.memory_space<vmem>>, vector<1x256xf32>
    %18 = vector.broadcast %17 : vector<1x256xf32> to vector<16x256xf32>
    %19 = arith.addf %16, %18 : vector<16x256xf32>
    %cst_17 = arith.constant 0.000000e+00 : f32
    %20 = vector.broadcast %cst_17 : f32 to vector<16x256xf32>
    %21 = arith.maximumf %19, %20 : vector<16x256xf32>
    %c0_18 = arith.constant 0 : index
    %c0_19 = arith.constant 0 : index
    %22 = vector.load %arg8[%c0_18, %c0_19] : memref<256x256xf32, #tpu.memory_space<vmem>>, vector<256x256xf32>
    %cst_20 = arith.constant dense<0.000000e+00> : vector<16x256xf32>
    %23 = tpu.matmul %21, %22, %cst_20 {dimension_numbers = #tpu.dot_dimension_numbers<[1], [0], [0], [1], [0, 0, 1, 1], [], []>} : vector<16x256xf32>, vector<256x256xf32>, vector<16x256xf32> -> vector<16x256xf32>
    %c0_21 = arith.constant 0 : index
    %c0_22 = arith.constant 0 : index
    %24 = vector.load %arg9[%c0_21, %c0_22] : memref<1x256xf32, #tpu.memory_space<vmem>>, vector<1x256xf32>
    %25 = vector.broadcast %24 : vector<1x256xf32> to vector<16x256xf32>
    %26 = arith.addf %23, %25 : vector<16x256xf32>
    %cst_23 = arith.constant 0.000000e+00 : f32
    %27 = vector.broadcast %cst_23 : f32 to vector<16x256xf32>
    %28 = arith.maximumf %26, %27 : vector<16x256xf32>
    %c0_24 = arith.constant 0 : index
    %c0_25 = arith.constant 0 : index
    %29 = vector.load %arg10[%c0_24, %c0_25] : memref<256x256xf32, #tpu.memory_space<vmem>>, vector<256x256xf32>
    %cst_26 = arith.constant dense<0.000000e+00> : vector<16x256xf32>
    %30 = tpu.matmul %28, %29, %cst_26 {dimension_numbers = #tpu.dot_dimension_numbers<[1], [0], [0], [1], [0, 0, 1, 1], [], []>} : vector<16x256xf32>, vector<256x256xf32>, vector<16x256xf32> -> vector<16x256xf32>
    %c0_27 = arith.constant 0 : index
    %c0_28 = arith.constant 0 : index
    %31 = vector.load %arg11[%c0_27, %c0_28] : memref<1x256xf32, #tpu.memory_space<vmem>>, vector<1x256xf32>
    %32 = vector.broadcast %31 : vector<1x256xf32> to vector<16x256xf32>
    %33 = arith.addf %30, %32 : vector<16x256xf32>
    %cst_29 = arith.constant 0.000000e+00 : f32
    %34 = vector.broadcast %cst_29 : f32 to vector<16x256xf32>
    %35 = arith.maximumf %33, %34 : vector<16x256xf32>
    %c0_30 = arith.constant 0 : index
    %c0_31 = arith.constant 0 : index
    %36 = vector.load %arg12[%c0_30, %c0_31] : memref<256x256xf32, #tpu.memory_space<vmem>>, vector<256x256xf32>
    %cst_32 = arith.constant dense<0.000000e+00> : vector<16x256xf32>
    %37 = tpu.matmul %35, %36, %cst_32 {dimension_numbers = #tpu.dot_dimension_numbers<[1], [0], [0], [1], [0, 0, 1, 1], [], []>} : vector<16x256xf32>, vector<256x256xf32>, vector<16x256xf32> -> vector<16x256xf32>
    %c0_33 = arith.constant 0 : index
    %c0_34 = arith.constant 0 : index
    %38 = vector.load %arg13[%c0_33, %c0_34] : memref<1x256xf32, #tpu.memory_space<vmem>>, vector<1x256xf32>
    %39 = vector.broadcast %38 : vector<1x256xf32> to vector<16x256xf32>
    %40 = arith.addf %37, %39 : vector<16x256xf32>
    %cst_35 = arith.constant 0.000000e+00 : f32
    %41 = vector.broadcast %cst_35 : f32 to vector<16x256xf32>
    %42 = arith.maximumf %40, %41 : vector<16x256xf32>
    %c0_36 = arith.constant 0 : index
    %c0_37 = arith.constant 0 : index
    %43 = vector.load %arg14[%c0_36, %c0_37] : memref<256x128xf32, #tpu.memory_space<vmem>>, vector<256x128xf32>
    %cst_38 = arith.constant dense<0.000000e+00> : vector<16x128xf32>
    %44 = tpu.matmul %42, %43, %cst_38 {dimension_numbers = #tpu.dot_dimension_numbers<[1], [0], [0], [1], [0, 0, 1, 1], [], []>} : vector<16x256xf32>, vector<256x128xf32>, vector<16x128xf32> -> vector<16x128xf32>
    %c0_39 = arith.constant 0 : index
    %c0_40 = arith.constant 0 : index
    %45 = vector.load %arg15[%c0_39, %c0_40] : memref<1x128xf32, #tpu.memory_space<vmem>>, vector<1x128xf32>
    %46 = vector.broadcast %45 : vector<1x128xf32> to vector<16x128xf32>
    %47 = arith.addf %44, %46 : vector<16x128xf32>
    %c0_41 = arith.constant 0 : index
    %c0_42 = arith.constant 0 : index
    %48 = vector.load %arg16[%c0_41, %c0_42] : memref<16x128xf32, #tpu.memory_space<vmem>>, vector<16x128xf32>
    tpu.vector_store %arg16[%c0_41, %c0_42], %47 {strides = array<i32>} : memref<16x128xf32, #tpu.memory_space<vmem>>, vector<16x128xf32>,
    return
  }
  func.func @transform_0(%arg0: i32) -> (i32, i32) {
    %c0_i32 = arith.constant 0 : i32
    %c0_i32_0 = arith.constant 0 : i32
    return %arg0, %c0_i32 : i32, i32
  }
  func.func @transform_1(%arg0: i32) -> (i32, i32) {
    %c0_i32 = arith.constant 0 : i32
    %c0_i32_0 = arith.constant 0 : i32
    %c0_i32_1 = arith.constant 0 : i32
    return %c0_i32, %c0_i32_0 : i32, i32
  }
  func.func @transform_2(%arg0: i32) -> (i32, i32) {
    %c0_i32 = arith.constant 0 : i32
    %c0_i32_0 = arith.constant 0 : i32
    %c0_i32_1 = arith.constant 0 : i32
    return %c0_i32, %c0_i32_0 : i32, i32
  }
  func.func @transform_3(%arg0: i32) -> (i32, i32) {
    %c0_i32 = arith.constant 0 : i32
    %c0_i32_0 = arith.constant 0 : i32
    %c0_i32_1 = arith.constant 0 : i32
    return %c0_i32, %c0_i32_0 : i32, i32
  }
  func.func @transform_4(%arg0: i32) -> (i32, i32) {
    %c0_i32 = arith.constant 0 : i32
    %c0_i32_0 = arith.constant 0 : i32
    %c0_i32_1 = arith.constant 0 : i32
    return %c0_i32, %c0_i32_0 : i32, i32
  }
  func.func @transform_5(%arg0: i32) -> (i32, i32) {
    %c0_i32 = arith.constant 0 : i32
    %c0_i32_0 = arith.constant 0 : i32
    %c0_i32_1 = arith.constant 0 : i32
    return %c0_i32, %c0_i32_0 : i32, i32
  }
  func.func @transform_6(%arg0: i32) -> (i32, i32) {
    %c0_i32 = arith.constant 0 : i32
    %c0_i32_0 = arith.constant 0 : i32
    %c0_i32_1 = arith.constant 0 : i32
    return %c0_i32, %c0_i32_0 : i32, i32
  }
  func.func @transform_7(%arg0: i32) -> (i32, i32) {
    %c0_i32 = arith.constant 0 : i32
    %c0_i32_0 = arith.constant 0 : i32
    %c0_i32_1 = arith.constant 0 : i32
    return %c0_i32, %c0_i32_0 : i32, i32
  }
  func.func @transform_8(%arg0: i32) -> (i32, i32) {
    %c0_i32 = arith.constant 0 : i32
    %c0_i32_0 = arith.constant 0 : i32
    %c0_i32_1 = arith.constant 0 : i32
    return %c0_i32, %c0_i32_0 : i32, i32
  }
  func.func @transform_9(%arg0: i32) -> (i32, i32) {
    %c0_i32 = arith.constant 0 : i32
    %c0_i32_0 = arith.constant 0 : i32
    %c0_i32_1 = arith.constant 0 : i32
    return %c0_i32, %c0_i32_0 : i32, i32
  }
  func.func @transform_10(%arg0: i32) -> (i32, i32) {
    %c0_i32 = arith.constant 0 : i32
    %c0_i32_0 = arith.constant 0 : i32
    %c0_i32_1 = arith.constant 0 : i32
    return %c0_i32, %c0_i32_0 : i32, i32
  }
  func.func @transform_11(%arg0: i32) -> (i32, i32) {
    %c0_i32 = arith.constant 0 : i32
    %c0_i32_0 = arith.constant 0 : i32
    %c0_i32_1 = arith.constant 0 : i32
    return %c0_i32, %c0_i32_0 : i32, i32
  }
  func.func @transform_12(%arg0: i32) -> (i32, i32) {
    %c0_i32 = arith.constant 0 : i32
    %c0_i32_0 = arith.constant 0 : i32
    %c0_i32_1 = arith.constant 0 : i32
    return %c0_i32, %c0_i32_0 : i32, i32
  }
  func.func @transform_13(%arg0: i32) -> (i32, i32) {
    %c0_i32 = arith.constant 0 : i32
    %c0_i32_0 = arith.constant 0 : i32
    %c0_i32_1 = arith.constant 0 : i32
    return %c0_i32, %c0_i32_0 : i32, i32
  }
  func.func @transform_14(%arg0: i32) -> (i32, i32) {
    %c0_i32 = arith.constant 0 : i32
    %c0_i32_0 = arith.constant 0 : i32
    %c0_i32_1 = arith.constant 0 : i32
    return %c0_i32, %c0_i32_0 : i32, i32
  }
  func.func @transform_15(%arg0: i32) -> (i32, i32) {
    %c0_i32 = arith.constant 0 : i32
    %c0_i32_0 = arith.constant 0 : i32
    return %arg0, %c0_i32 : i32, i32
  }
}

</mosaic_0001>

<bundles_post_ra>
// kernel: _forward.1
= control target key start
LH: loop header
LB: loop body
LE: loop exit
PB: predicated region body
PF: predicated region fallthrough
CT: control target
= control target key end

     0   :  { %20 = vsyncpa [#allocation3], 0  ;;  %s1899_s0 = inlined_call_operand.vmem [shape: f32[16,64], index: 0, kind: input, shape index: {}]   ;;  %s1900_s1 = inlined_call_operand.vmem [shape: f32[64,256], index: 1, kind: input, shape index: {}]   ;;  %s1901_s2 = inlined_call_operand.vmem [shape: f32[1,256], index: 2, kind: input, shape index: {}]   ;;  %s1902_s3 = inlined_call_operand.vmem [shape: f32[256,256], index: 3, kind: input, shape index: {}]   ;;  %s1903_s4 = inlined_call_operand.vmem [shape: f32[1,256], index: 4, kind: input, shape index: {}]   ;;  %s1904_s5 = inlined_call_operand.vmem [shape: f32[256,256], index: 5, kind: input, shape index: {}]   ;;  %s1905_s6 = inlined_call_operand.vmem [shape: f32[1,256], index: 6, kind: input, shape index: {}]   ;;  %s1906_s7 = inlined_call_operand.hbm [shape: f32[256,256], index: 7, kind: input, shape index: {}]   ;;  %s1907_s8 = inlined_call_operand.vmem [shape: f32[1,256], index: 8, kind: input, shape index: {}]   ;;  %s1908_s9 = inlined_call_operand.hbm [shape: f32[256,256], index: 9, kind: input, shape index: {}]   ;;  %s1909_s10 = inlined_call_operand.vmem [shape: f32[1,256], index: 10, kind: input, shape index: {}]   ;;  %s1910_s11 = inlined_call_operand.hbm [shape: f32[256,256], index: 11, kind: input, shape index: {}]   ;;  %s1911_s12 = inlined_call_operand.vmem [shape: f32[1,256], index: 12, kind: input, shape index: {}]   ;;  %s1912_s13 = inlined_call_operand.vmem [shape: f32[256,128], index: 13, kind: input, shape index: {}]   ;;  %s1913_s14 = inlined_call_operand.vmem [shape: f32[1,128], index: 14, kind: input, shape index: {}]   ;;  %s1914_s15 = inlined_call_operand.hbm [shape: f32[16,128], index: 15, kind: output, shape index: {}]  }
   0x1   :  { %21 = vsyncpa [#allocation6], 0 }
   0x2   :  { %22 = vsyncpa [#allocation4], 0  ;;  %s56_s20 = sshll.u32 %s1908_s9, 4  ;;  %s1228_s21 = smov [#allocation5]   ;;  %s57_s20 = int_to_ptr.hbm [resolvable:$true] %s56_s20 }
   0x3   :  { %s58_s22 = sshll.u32 %s1228_s21, 4  ;;  %s41_s25 = sshll.u32 %s1906_s7, 4  ;;  %s59_s22 = int_to_ptr.vmem [resolvable:$true] %s58_s22  ;;  %s42_s25 = int_to_ptr.hbm [resolvable:$true] %s41_s25 }
   0x4   :  { %s1229_s26 = smov 256   ;;  %s1230_s27 = smov 16  }
   0x5   :  { %64 = dma.hbm_to_vmem [thread:$0]  %s57_s20, 8192, %s59_s22, [#allocation6], %s1229_s26, %s1229_s26, %s1230_s27  }
   0x6   :  { %s1231_s28 = smov [#allocation2]   ;;  %s71_s17 = sshll.u32 %s1910_s11, 4  ;;  %s72_s17 = int_to_ptr.hbm [resolvable:$true] %s71_s17 }
   0x7   :  { %s43_s29 = sshll.u32 %s1231_s28, 4  ;;  %s1232_s9 = smov [#allocation7]   ;;  %s44_s29 = int_to_ptr.vmem [resolvable:$true] %s43_s29 }
   0x8   :  { %49 = dma.hbm_to_vmem [thread:$0]  %s42_s25, 8192, %s44_s29, [#allocation3], %s1229_s26, %s1229_s26, %s1230_s27  }
   0x9   :  { %s73_s18 = sshll.u32 %s1232_s9, 4  ;;  %s74_s18 = int_to_ptr.vmem [resolvable:$true] %s73_s18 }
   0xa   :  { %79 = dma.hbm_to_vmem [thread:$0]  %s72_s17, 8192, %s74_s18, [#allocation6], %s1229_s26, %s1229_s26, %s1230_s27  }
   0xb   :  { %1222 = dma.done.wait [#allocation3], 8192  }
   0xc   :  { %1223 = vsyncadd [#allocation3], 4294959104 }
   0xd   :  { %1224 = dma.done.wait [#allocation6], 16384  }
   0xe   :  { %1225 = vsyncadd [#allocation6], 4294950912  ;;  %v114_v0 = vld [vmem:[%s1900_s1 + $0x70] sm:$0xff]  ;;  %v112_v1 = vld [vmem:[%s1900_s1 + $0x60] sm:$0xff]  ;;  %vm122_vm0 = vcmask 523264   ;;  %s1233_s22 = smov [#allocation8]  }
   0xf   :  { %v115_v2 = vld [vmem:[%s1900_s1 + $0x78] sm:$0xff]  ;;  %137 = vmatpush.msra.mxu0 %v114_v0  ;;  %v113_v3 = vld [vmem:[%s1900_s1 + $0x68] sm:$0xff]  ;;  %v110_v4 = vld [vmem:[%s1900_s1 + $0x50] sm:$0xff]  ;;  %s1097_s23 = sshll.u32 %s1233_s22, 4  ;;  %s1234_s26 = smov 128   ;;  %s1098_s23 = int_to_ptr.vmem [resolvable:$true] %s1097_s23 }
  0x10   :  { %160 = vmatpush.msra.mxu1 %v115_v2  ;;  %v111_v5 = vld [vmem:[%s1900_s1 + $0x58] sm:$0xff]  ;;  %v108_v6 = vld [vmem:[%s1900_s1 + $0x40] sm:$0xff]  ;;  %v109_v7 = vld [vmem:[%s1900_s1 + $0x48] sm:$0xff] }
  0x11   :  { %138 = vmatpush.msra.mxu0 %v112_v1  ;;  %v106_v8 = vld [vmem:[%s1900_s1 + $0x30] sm:$0xff]  ;;  %v107_v9 = vld [vmem:[%s1900_s1 + $0x38] sm:$0xff]  ;;  %v207_v11 = vld [vmem:[%s1902_s3 + $0xe0] sm:$0xff] }
  0x12   :  { %161 = vmatpush.msra.mxu1 %v113_v3  ;;  %v209_v10 = vld [vmem:[%s1902_s3 + $0xf0] sm:$0xff]  ;;  %v104_v13 = vld [vmem:[%s1900_s1 + $0x20] sm:$0xff]  ;;  %v105_v14 = vld [vmem:[%s1900_s1 + $0x28] sm:$0xff] }
  0x13   :  { %139 = vmatpush.msra.mxu0 %v110_v4  ;;  %v241_v12 = vld [vmem:[%s1902_s3 + $0x1f0] sm:$0xff]  ;;  %249 = vmatpush.msra.mxu2 %v209_v10  ;;  %v239_v15 = vld [vmem:[%s1902_s3 + $0x1e0] sm:$0xff]  ;;  %v103_v19 = vld [vmem:[%s1900_s1 + $0x18] sm:$0xff] }
  0x14   :  { %162 = vmatpush.msra.mxu1 %v111_v5  ;;  %272 = vmatpush.msra.mxu3 %v241_v12  ;;  %v205_v16 = vld [vmem:[%s1902_s3 + $0xd0] sm:$0xff]  ;;  %v203_v20 = vld [vmem:[%s1902_s3 + $0xc0] sm:$0xff]  ;;  %v101_v23 = vld [vmem:[%s1900_s1 + $0x8] sm:$0xff] }
  0x15   :  { %140 = vmatpush.msra.mxu0 %v108_v6  ;;  %v237_v17 = vld [vmem:[%s1902_s3 + $0x1d0] sm:$0xff]  ;;  %250 = vmatpush.msra.mxu2 %v207_v11  ;;  %v235_v21 = vld [vmem:[%s1902_s3 + $0x1c0] sm:$0xff]  ;;  %v210_v25 = vld [vmem:[%s1902_s3 + $0xf8] sm:$0xff] }
  0x16   :  { %163 = vmatpush.msra.mxu1 %v109_v7  ;;  %v102_v18 = vld [vmem:[%s1900_s1 + $0x10] sm:$0xff]  ;;  %273 = vmatpush.msra.mxu3 %v239_v15  ;;  %v100_v22 = vld [vmem:[%s1900_s1] sm:$0xff]  ;;  %v242_v26 = vld [vmem:[%s1902_s3 + $0x1f8] sm:$0xff] }
  0x17   :  { %141 = vmatpush.msra.mxu0 %v106_v8  ;;  %251 = vmatpush.msra.mxu2 %v205_v16  ;;  %v98_v24 = vld [vmem:[%s1899_s0] sm:$0xff]  ;;  %v201_v27 = vld [vmem:[%s1902_s3 + $0xb0] sm:$0xff]  ;;  %v208_v29 = vld [vmem:[%s1902_s3 + $0xe8] sm:$0xff] }
  0x18   :  { %164 = vmatpush.msra.mxu1 %v107_v9  ;;  %274 = vmatpush.msra.mxu3 %v237_v17  ;;  %v233_v28 = vld [vmem:[%s1902_s3 + $0x1b0] sm:$0xff]  ;;  %v240_v30 = vld [vmem:[%s1902_s3 + $0x1e8] sm:$0xff]  ;;  %v199_v31 = vld [vmem:[%s1902_s3 + $0xa0] sm:$0xff] }
  0x19   :  { %142 = vmatpush.msra.mxu0 %v104_v13  ;;  %252 = vmatpush.msra.mxu2 %v203_v20  ;;  %v231_v32 = vld [vmem:[%s1902_s3 + $0x1a0] sm:$0xff]  ;;  %v206_v33 = vld [vmem:[%s1902_s3 + $0xd8] sm:$0xff]  ;;  %v197_v35 = vld [vmem:[%s1902_s3 + $0x90] sm:$0xff] }
  0x1a   :  { %165 = vmatpush.msra.mxu1 %v105_v14  ;;  %275 = vmatpush.msra.mxu3 %v235_v21  ;;  %v238_v34 = vld [vmem:[%s1902_s3 + $0x1d8] sm:$0xff]  ;;  %v229_v36 = vld [vmem:[%s1902_s3 + $0x190] sm:$0xff]  ;;  %v204_v37 = vld [vmem:[%s1902_s3 + $0xc8] sm:$0xff] }
  0x1b   :  { %143 = vmatpush.msra.mxu0 %v102_v18  ;;  %253 = vmatpush.msra.mxu2 %v201_v27  ;;  %v236_v38 = vld [vmem:[%s1902_s3 + $0x1c8] sm:$0xff]  ;;  %v202_v40 = vld [vmem:[%s1902_s3 + $0xb8] sm:$0xff]  ;;  %v195_v42 = vld [vmem:[%s1902_s3 + $0x80] sm:$0xff] }
  0x1c   :  { %166 = vmatpush.msra.mxu1 %v103_v19  ;;  %276 = vmatpush.msra.mxu3 %v233_v28  ;;  %v99_v39 = vld [vmem:[%s1899_s0 + $0x8] sm:$0xff]  ;;  %v234_v41 = vld [vmem:[%s1902_s3 + $0x1b8] sm:$0xff]  ;;  %v227_v43 = vld [vmem:[%s1902_s3 + $0x180] sm:$0xff] }
  0x1d   :  { %144 = vmatpush.msra.mxu0 %v100_v22  ;;  %254 = vmatpush.msra.mxu2 %v199_v31  ;;  %v200_v44 = vld [vmem:[%s1902_s3 + $0xa8] sm:$0xff]  ;;  %v193_v46 = vld [vmem:[%s1902_s3 + $0x70] sm:$0xff]  ;;  %v198_v48 = vld [vmem:[%s1902_s3 + $0x98] sm:$0xff] }
  0x1e   :  { %167 = vmatpush.msra.mxu1 %v101_v23  ;;  %1113 = vmatmul.msk.f32.vlgmr.msra.gmra.mxu0 %vm122_vm0, %v98_v24  ;;  %v232_v45 = vld [vmem:[%s1902_s3 + $0x1a8] sm:$0xff]  ;;  %v225_v47 = vld [vmem:[%s1902_s3 + $0x170] sm:$0xff]  ;;  %v230_v49 = vld [vmem:[%s1902_s3 + $0x198] sm:$0xff] }
  0x1f   :  { %1115 = vmatmul.msk.f32.vlgmr.msra.gmra.mxu1 %vm122_vm0, %v98_v24  ;;  %295 = vmatpush.msrb.mxu0 %v210_v25  ;;  %v191_v50 = vld [vmem:[%s1902_s3 + $0x60] sm:$0xff]  ;;  %v196_v52 = vld [vmem:[%s1902_s3 + $0x88] sm:$0xff]  ;;  %v189_v54 = vld [vmem:[%s1902_s3 + $0x50] sm:$0xff] }
  0x20   :  { %318 = vmatpush.msrb.mxu1 %v242_v26  ;;  %277 = vmatpush.msra.mxu3 %v231_v32  ;;  %v223_v51 = vld [vmem:[%s1902_s3 + $0x160] sm:$0xff]  ;;  %v228_v53 = vld [vmem:[%s1902_s3 + $0x188] sm:$0xff]  ;;  %v221_v55 = vld [vmem:[%s1902_s3 + $0x150] sm:$0xff] }
  0x21   :  { %296 = vmatpush.msrb.mxu0 %v208_v29  ;;  %255 = vmatpush.msra.mxu2 %v197_v35  ;;  %v194_v56 = vld [vmem:[%s1902_s3 + $0x78] sm:$0xff]  ;;  %v187_v58 = vld [vmem:[%s1902_s3 + $0x40] sm:$0xff]  ;;  %v192_v60 = vld [vmem:[%s1902_s3 + $0x68] sm:$0xff] }
  0x22   :  { %319 = vmatpush.msrb.mxu1 %v240_v30  ;;  %278 = vmatpush.msra.mxu3 %v229_v36  ;;  %v226_v57 = vld [vmem:[%s1902_s3 + $0x178] sm:$0xff]  ;;  %v219_v59 = vld [vmem:[%s1902_s3 + $0x140] sm:$0xff]  ;;  %v224_v61 = vld [vmem:[%s1902_s3 + $0x168] sm:$0xff] }
  0x23   :  { %297 = vmatpush.msrb.mxu0 %v206_v33  ;;  %256 = vmatpush.msra.mxu2 %v195_v42  ;;  %v185_v62 = vld [vmem:[%s1902_s3 + $0x30] sm:$0xff]  ;;  %v190_v63 = vld [vmem:[%s1902_s3 + $0x58] sm:$0xff]  ;;  %v188_v1 = vld [vmem:[%s1902_s3 + $0x48] sm:$0xff] }
  0x24   :  { %320 = vmatpush.msrb.mxu1 %v238_v34  ;;  %279 = vmatpush.msra.mxu3 %v227_v43  ;;  %v222_v0 = vld [vmem:[%s1902_s3 + $0x158] sm:$0xff]  ;;  %v220_v2 = vld [vmem:[%s1902_s3 + $0x148] sm:$0xff]  ;;  %v183_v4 = vld [vmem:[%s1902_s3 + $0x20] sm:$0xff] }
  0x25   :  { %298 = vmatpush.msrb.mxu0 %v204_v37  ;;  %257 = vmatpush.msra.mxu2 %v193_v46  ;;  %v186_v3 = vld [vmem:[%s1902_s3 + $0x38] sm:$0xff]  ;;  %v217_v5 = vld [vmem:[%s1902_s3 + $0x130] sm:$0xff]  ;;  %v184_v6 = vld [vmem:[%s1902_s3 + $0x28] sm:$0xff] }
  0x26   :  { %321 = vmatpush.msrb.mxu1 %v236_v38  ;;  %1114 = vmatmul.msk.f32.gmra.mxu0 %vm122_vm0, %v99_v39  ;;  %v218_v7 = vld [vmem:[%s1902_s3 + $0x138] sm:$0xff]  ;;  %v181_v8 = vld [vmem:[%s1902_s3 + $0x10] sm:$0xff]  ;;  %v215_v9 = vld [vmem:[%s1902_s3 + $0x120] sm:$0xff] }
  0x27   :  { %1116 = vmatmul.msk.f32.gmra.mxu1 %vm122_vm0, %v99_v39  ;;  %299 = vmatpush.msrb.mxu0 %v202_v40  ;;  %v182_v10 = vld [vmem:[%s1902_s3 + $0x18] sm:$0xff]  ;;  %v216_v11 = vld [vmem:[%s1902_s3 + $0x128] sm:$0xff]  ;;  %v179_v12 = vld [vmem:[%s1902_s3] sm:$0xff] }
  0x28   :  { %322 = vmatpush.msrb.mxu1 %v234_v41  ;;  %280 = vmatpush.msra.mxu3 %v225_v47  ;;  %v213_v13 = vld [vmem:[%s1902_s3 + $0x110] sm:$0xff]  ;;  %v180_v14 = vld [vmem:[%s1902_s3 + $0x8] sm:$0xff]  ;;  %v214_v15 = vld [vmem:[%s1902_s3 + $0x118] sm:$0xff] }
  0x29   :  { %300 = vmatpush.msrb.mxu0 %v200_v44  ;;  %258 = vmatpush.msra.mxu2 %v191_v50  ;;  %v211_v16 = vld [vmem:[%s1902_s3 + $0x100] sm:$0xff]  ;;  %v212_v17 = vld [vmem:[%s1902_s3 + $0x108] sm:$0xff]  ;;  %v407_v18 = vld [vmem:[%s1904_s5 + $0x1f0] sm:$0xff] }
  0x2a   :  { %323 = vmatpush.msrb.mxu1 %v232_v45  ;;  %281 = vmatpush.msra.mxu3 %v223_v51  ;;  %v408_v19 = vld [vmem:[%s1904_s5 + $0x1f8] sm:$0xff]  ;;  %v405_v20 = vld [vmem:[%s1904_s5 + $0x1e0] sm:$0xff]  ;;  %v406_v21 = vld [vmem:[%s1904_s5 + $0x1e8] sm:$0xff] }
  0x2b   :  { %301 = vmatpush.msrb.mxu0 %v198_v48  ;;  %259 = vmatpush.msra.mxu2 %v189_v54  ;;  %v403_v22 = vld [vmem:[%s1904_s5 + $0x1d0] sm:$0xff]  ;;  %v404_v23 = vld [vmem:[%s1904_s5 + $0x1d8] sm:$0xff]  ;;  %v373_v26 = vld [vmem:[%s1904_s5 + $0xe0] sm:$0xff] }
  0x2c   :  { %324 = vmatpush.msrb.mxu1 %v230_v49  ;;  %282 = vmatpush.msra.mxu3 %v221_v55  ;;  %v375_v24 = vld [vmem:[%s1904_s5 + $0xf0] sm:$0xff]  ;;  %v376_v25 = vld [vmem:[%s1904_s5 + $0xf8] sm:$0xff]  ;;  %v401_v27 = vld [vmem:[%s1904_s5 + $0x1c0] sm:$0xff] }
  0x2d   :  { %302 = vmatpush.msrb.mxu0 %v196_v52  ;;  %260 = vmatpush.msra.mxu2 %v187_v58  ;;  %v402_v28 = vld [vmem:[%s1904_s5 + $0x1c8] sm:$0xff]  ;;  %v371_v30 = vld [vmem:[%s1904_s5 + $0xd0] sm:$0xff]  ;;  %v372_v31 = vld [vmem:[%s1904_s5 + $0xd8] sm:$0xff] }
  0x2e   :  { %325 = vmatpush.msrb.mxu1 %v228_v53  ;;  %283 = vmatpush.msra.mxu3 %v219_v59  ;;  %v374_v29 = vld [vmem:[%s1904_s5 + $0xe8] sm:$0xff]  ;;  %v399_v32 = vld [vmem:[%s1904_s5 + $0x1b0] sm:$0xff]  ;;  %v400_v33 = vld [vmem:[%s1904_s5 + $0x1b8] sm:$0xff] }
  0x2f   :  { %303 = vmatpush.msrb.mxu0 %v194_v56  ;;  %261 = vmatpush.msra.mxu2 %v185_v62  ;;  %v369_v34 = vld [vmem:[%s1904_s5 + $0xc0] sm:$0xff]  ;;  %v370_v35 = vld [vmem:[%s1904_s5 + $0xc8] sm:$0xff]  ;;  %v367_v38 = vld [vmem:[%s1904_s5 + $0xb0] sm:$0xff] }
  0x30   :  { %326 = vmatpush.msrb.mxu1 %v226_v57  ;;  %284 = vmatpush.msra.mxu3 %v217_v5  ;;  %v397_v36 = vld [vmem:[%s1904_s5 + $0x1a0] sm:$0xff]  ;;  %v398_v37 = vld [vmem:[%s1904_s5 + $0x1a8] sm:$0xff]  ;;  %v368_v39 = vld [vmem:[%s1904_s5 + $0xb8] sm:$0xff] }
  0x31   :  { %304 = vmatpush.msrb.mxu0 %v192_v60  ;;  %262 = vmatpush.msra.mxu2 %v183_v4  ;;  %v395_v40 = vld [vmem:[%s1904_s5 + $0x190] sm:$0xff]  ;;  %v396_v41 = vld [vmem:[%s1904_s5 + $0x198] sm:$0xff]  ;;  %v365_v42 = vld [vmem:[%s1904_s5 + $0xa0] sm:$0xff] }
  0x32   :  { %327 = vmatpush.msrb.mxu1 %v224_v61  ;;  %285 = vmatpush.msra.mxu3 %v215_v9  ;;  %v366_v43 = vld [vmem:[%s1904_s5 + $0xa8] sm:$0xff]  ;;  %v116_v44 = vld [vmem:[%s1901_s2] sm:$0x3]  ;;  %v363_v47 = vld [vmem:[%s1904_s5 + $0x90] sm:$0xff]  ;;  %s1099_s2 = sshll.u32 %s1914_s15, 4  ;;  %s1100_s2 = int_to_ptr.hbm [resolvable:$true] %s1099_s2 }
  0x33   :  { %305 = vmatpush.msrb.mxu0 %v190_v63  ;;  %263 = vmatpush.msra.mxu2 %v181_v8  ;;  %v393_v45 = vld [vmem:[%s1904_s5 + $0x180] sm:$0xff]  ;;  %v394_v46 = vld [vmem:[%s1904_s5 + $0x188] sm:$0xff]  ;;  %v364_v48 = vld [vmem:[%s1904_s5 + $0x98] sm:$0xff]  ;;  %v118_v51 = vperm.slane %v116_v44, 0  ;;  %v119_v52 = vperm.slane %v116_v44, 1 }
  0x34   :  { %328 = vmatpush.msrb.mxu1 %v222_v0  ;;  %286 = vmatpush.msra.mxu3 %v213_v13  ;;  %v391_v49 = vld [vmem:[%s1904_s5 + $0x170] sm:$0xff]  ;;  %v392_v50 = vld [vmem:[%s1904_s5 + $0x178] sm:$0xff]  ;;  %v361_v53 = vld [vmem:[%s1904_s5 + $0x80] sm:$0xff] }
  0x35   :  { %306 = vmatpush.msrb.mxu0 %v188_v1  ;;  %264 = vmatpush.msra.mxu2 %v179_v12  ;;  %v362_v54 = vld [vmem:[%s1904_s5 + $0x88] sm:$0xff]  ;;  %v389_v55 = vld [vmem:[%s1904_s5 + $0x160] sm:$0xff]  ;;  %v359_v57 = vld [vmem:[%s1904_s5 + $0x70] sm:$0xff] }
  0x36   :  { %329 = vmatpush.msrb.mxu1 %v220_v2  ;;  %287 = vmatpush.msra.mxu3 %v211_v16  ;;  %v390_v56 = vld [vmem:[%s1904_s5 + $0x168] sm:$0xff]  ;;  %v360_v58 = vld [vmem:[%s1904_s5 + $0x78] sm:$0xff]  ;;  %v387_v61 = vld [vmem:[%s1904_s5 + $0x150] sm:$0xff] }
  0x37   :  { %307 = vmatpush.msrb.mxu0 %v186_v3  ;;  %415 = vmatpush.msrb.mxu2 %v375_v24  ;;  %v388_v62 = vld [vmem:[%s1904_s5 + $0x158] sm:$0xff]  ;;  %v385_v3 = vld [vmem:[%s1904_s5 + $0x140] sm:$0xff]  ;;  %v386_v4 = vld [vmem:[%s1904_s5 + $0x148] sm:$0xff] }
  0x38   :  { %330 = vmatpush.msrb.mxu1 %v218_v7  ;;  %438 = vmatpush.msrb.mxu3 %v407_v18  ;;  %v383_v12 = vld [vmem:[%s1904_s5 + $0x130] sm:$0xff]  ;;  %v358_v13 = vld [vmem:[%s1904_s5 + $0x68] sm:$0xff]  ;;  %v381_v16 = vld [vmem:[%s1904_s5 + $0x120] sm:$0xff] }
  0x39   :  { %308 = vmatpush.msrb.mxu0 %v184_v6  ;;  %416 = vmatpush.msrb.mxu2 %v373_v26  ;;  %v382_v18 = vld [vmem:[%s1904_s5 + $0x128] sm:$0xff]  ;;  %v377_v24 = vld [vmem:[%s1904_s5 + $0x100] sm:$0xff] }
  0x3a   :  { %331 = vmatpush.msrb.mxu1 %v216_v11  ;;  %439 = vmatpush.msrb.mxu3 %v405_v20  ;;  %v357_v11 = vld [vmem:[%s1904_s5 + $0x60] sm:$0xff]  ;;  %v379_v20 = vld [vmem:[%s1904_s5 + $0x110] sm:$0xff]  ;;  %v378_v26 = vld [vmem:[%s1904_s5 + $0x108] sm:$0xff] }
  0x3b   :  { %309 = vmatpush.msrb.mxu0 %v182_v10  ;;  %417 = vmatpush.msrb.mxu2 %v371_v30  ;;  %v348_v30 = vld [vmem:[%s1904_s5 + $0x18] sm:$0xff]  ;;  %v540_v44 = vld [vmem:[#allocation2 + $0xe8] sm:$0xff] }
  0x3c   :  { %332 = vmatpush.msrb.mxu1 %v214_v15  ;;  %440 = vmatpush.msrb.mxu3 %v403_v22  ;;  %v355_v15 = vld [vmem:[%s1904_s5 + $0x50] sm:$0xff]  ;;  %v380_v22 = vld [vmem:[%s1904_s5 + $0x118] sm:$0xff] }
  0x3d   :  { %310 = vmatpush.msrb.mxu0 %v180_v14  ;;  %418 = vmatpush.msrb.mxu2 %v369_v34  ;;  %v384_v14 = vld [vmem:[%s1904_s5 + $0x138] sm:$0xff] }
  0x3e   :  { %333 = vmatpush.msrb.mxu1 %v212_v17  ;;  %441 = vmatpush.msrb.mxu3 %v401_v27  ;;  %v356_v17 = vld [vmem:[%s1904_s5 + $0x58] sm:$0xff]  ;;  %v349_v27 = vld [vmem:[%s1904_s5 + $0x20] sm:$0xff] }
  0x3f   :  { %461 = vmatpush.msra.mxu0 %v376_v25  ;;  %419 = vmatpush.msrb.mxu2 %v367_v38  ;;  %v352_v25 = vld [vmem:[%s1904_s5 + $0x38] sm:$0xff] }
  0x40   :  { %484 = vmatpush.msra.mxu1 %v408_v19  ;;  %442 = vmatpush.msrb.mxu3 %v399_v32  ;;  %v353_v19 = vld [vmem:[%s1904_s5 + $0x40] sm:$0xff]  ;;  %v346_v32 = vld [vmem:[%s1904_s5 + $0x8] sm:$0xff]  ;;  %v574_v34 = vld [vmem:[#allocation2 + $0x1f8] sm:$0xff] }
  0x41   :  { %462 = vmatpush.msra.mxu0 %v374_v29  ;;  %420 = vmatpush.msrb.mxu2 %v365_v42  ;;  %v347_v29 = vld [vmem:[%s1904_s5 + $0x10] sm:$0xff]  ;;  %v570_v38 = vld [vmem:[#allocation2 + $0x1d8] sm:$0xff]  ;;  %v567_v42 = vld [vmem:[#allocation2 + $0x1c0] sm:$0xff] }
  0x42   :  { %485 = vmatpush.msra.mxu1 %v406_v21  ;;  %443 = vmatpush.msrb.mxu3 %v397_v36  ;;  %v354_v21 = vld [vmem:[%s1904_s5 + $0x48] sm:$0xff] }
  0x43   :  { %463 = vmatpush.msra.mxu0 %v372_v31  ;;  %421 = vmatpush.msrb.mxu2 %v363_v47  ;;  %v345_v31 = vld [vmem:[%s1904_s5] sm:$0xff]  ;;  %v572_v36 = vld [vmem:[#allocation2 + $0x1e8] sm:$0xff]  ;;  %v538_v47 = vld [vmem:[#allocation2 + $0xd8] sm:$0xff] }
  0x44   :  { %486 = vmatpush.msra.mxu1 %v404_v23  ;;  %444 = vmatpush.msrb.mxu3 %v395_v40  ;;  %v351_v23 = vld [vmem:[%s1904_s5 + $0x30] sm:$0xff]  ;;  %v542_v40 = vld [vmem:[#allocation2 + $0xf8] sm:$0xff] }
  0x45   :  { %464 = vmatpush.msra.mxu0 %v370_v35  ;;  %422 = vmatpush.msrb.mxu2 %v361_v53  ;;  %v571_v35 = vld [vmem:[#allocation2 + $0x1e0] sm:$0xff] }
  0x46   :  { %487 = vmatpush.msra.mxu1 %v402_v28  ;;  %445 = vmatpush.msrb.mxu3 %v393_v45  ;;  %v350_v28 = vld [vmem:[%s1904_s5 + $0x28] sm:$0xff]  ;;  %v1773_v45 = vld [vmem:[%s1903_s4] sm:$0x3] }
  0x47   :  { %465 = vmatpush.msra.mxu0 %v368_v39  ;;  %423 = vmatpush.msrb.mxu2 %v359_v57  ;;  %v541_v39 = vld [vmem:[#allocation2 + $0xf0] sm:$0xff]  ;;  %v563_v53 = vld [vmem:[#allocation2 + $0x1a0] sm:$0xff] }
  0x48   :  { %488 = vmatpush.msra.mxu1 %v400_v33  ;;  %446 = vmatpush.msrb.mxu3 %v391_v49  ;;  %v573_v33 = vld [vmem:[#allocation2 + $0x1f0] sm:$0xff]  ;;  %v566_v49 = vld [vmem:[#allocation2 + $0x1b8] sm:$0xff] }
  0x49   :  { %466 = vmatpush.msra.mxu0 %v366_v43  ;;  %424 = vmatpush.msrb.mxu2 %v357_v11  ;;  %v568_v43 = vld [vmem:[#allocation2 + $0x1c8] sm:$0xff]  ;;  %v561_v57 = vld [vmem:[#allocation2 + $0x190] sm:$0xff] }
  0x4a   :  { %489 = vmatpush.msra.mxu1 %v398_v37  ;;  %447 = vmatpush.msrb.mxu3 %v389_v55  ;;  %v569_v37 = vld [vmem:[#allocation2 + $0x1d0] sm:$0xff] }
  0x4b   :  { %467 = vmatpush.msra.mxu0 %v364_v48  ;;  %425 = vmatpush.msrb.mxu2 %v355_v15  ;;  %v565_v48 = vld [vmem:[#allocation2 + $0x1b0] sm:$0xff] }
  0x4c   :  { %490 = vmatpush.msra.mxu1 %v396_v41  ;;  %448 = vmatpush.msrb.mxu3 %v387_v61  ;;  %v539_v41 = vld [vmem:[#allocation2 + $0xe0] sm:$0xff]  ;;  %v533_v55 = vld [vmem:[#allocation2 + $0xb0] sm:$0xff]  ;;  %v532_v61 = vld [vmem:[#allocation2 + $0xa8] sm:$0xff] }
  0x4d   :  { %468 = vmatpush.msra.mxu0 %v362_v54  ;;  %426 = vmatpush.msrb.mxu2 %v353_v19  ;;  %v564_v54 = vld [vmem:[#allocation2 + $0x1a8] sm:$0xff] }
  0x4e   :  { %491 = vmatpush.msra.mxu1 %v394_v46  ;;  %449 = vmatpush.msrb.mxu3 %v385_v3  ;;  %v537_v46 = vld [vmem:[#allocation2 + $0xd0] sm:$0xff]  ;;  %v245_v3 = vperm.slane %v1773_v45, 0 }
  0x4f   :  { %469 = vmatpush.msra.mxu0 %v360_v58  ;;  %427 = vmatpush.msrb.mxu2 %v351_v23  ;;  %v562_v58 = vld [vmem:[#allocation2 + $0x198] sm:$0xff]  ;;  %v555_v23 = vld [vmem:[#allocation2 + $0x160] sm:$0xff] }
  0x50   :  { %492 = vmatpush.msra.mxu1 %v392_v50  ;;  %450 = vmatpush.msrb.mxu3 %v383_v12  ;;  %v535_v50 = vld [vmem:[#allocation2 + $0xc0] sm:$0xff] }
  0x51   :  { %470 = vmatpush.msra.mxu0 %v358_v13  ;;  %428 = vmatpush.msrb.mxu2 %v349_v27  ;;  %v553_v27 = vld [vmem:[#allocation2 + $0x150] sm:$0xff] }
  0x52   :  { %493 = vmatpush.msra.mxu1 %v390_v56  ;;  %451 = vmatpush.msrb.mxu3 %v381_v16  ;;  %v534_v56 = vld [vmem:[#allocation2 + $0xb8] sm:$0xff] }
  0x53   :  { %471 = vmatpush.msra.mxu0 %v356_v17  ;;  %429 = vmatpush.msrb.mxu2 %v347_v29  ;;  %v554_v29 = vld [vmem:[#allocation2 + $0x158] sm:$0xff] }
  0x54   :  { %494 = vmatpush.msra.mxu1 %v388_v62  ;;  %452 = vmatpush.msrb.mxu3 %v379_v20 }
  0x55   :  { %472 = vmatpush.msra.mxu0 %v354_v21  ;;  %430 = vmatpush.msrb.mxu2 %v345_v31  ;;  %v551_v31 = vld [vmem:[#allocation2 + $0x140] sm:$0xff] }
  0x56   :  { %495 = vmatpush.msra.mxu1 %v386_v4  ;;  %453 = vmatpush.msrb.mxu3 %v377_v24  ;;  %v557_v4 = vld [vmem:[#allocation2 + $0x170] sm:$0xff]  ;;  %v530_v24 = vld [vmem:[#allocation2 + $0x98] sm:$0xff] }
  0x57   :  { %473 = vmatpush.msra.mxu0 %v352_v25  ;;  %v556_v25 = vld [vmem:[#allocation2 + $0x168] sm:$0xff] }
  0x58   :  { %496 = vmatpush.msra.mxu1 %v384_v14 }
  0x59   :  { %474 = vmatpush.msra.mxu0 %v350_v28  ;;  %v528_v28 = vld [vmem:[#allocation2 + $0x88] sm:$0xff] }
  0x5a   :  { %497 = vmatpush.msra.mxu1 %v382_v18 }
  0x5b   :  { %475 = vmatpush.msra.mxu0 %v348_v30  ;;  %v525_v30 = vld [vmem:[#allocation2 + $0x70] sm:$0xff] }
  0x5c   :  { %498 = vmatpush.msra.mxu1 %v380_v22  ;;  %v529_v22 = vld [vmem:[#allocation2 + $0x90] sm:$0xff] }
  0x5d   :  { %476 = vmatpush.msra.mxu0 %v346_v32  ;;  %v526_v32 = vld [vmem:[#allocation2 + $0x78] sm:$0xff] }
  0x5e   :  { %499 = vmatpush.msra.mxu1 %v378_v26  ;;  %v527_v26 = vld [vmem:[#allocation2 + $0x80] sm:$0xff] }
  0x9b   :  { %v146_v59 = vpop.f32.mrf.mxu0 }
  0x9c   :  { %v169_v60 = vpop.f32.mrf.mxu1  ;;  %v147_v63 = vadd.f32 %v146_v59, %v118_v51 }
  0x9d   :  { %v170_v0 = vadd.f32 %v169_v60, %v119_v52  ;;  %v531_v60 = vld [vmem:[#allocation2 + $0xa0] sm:$0xff] }
  0x9e   :  { %v175_v1 = vmax.f32 %v147_v63, 0.0 }
  0x9f   :  { %v176_v2 = vmax.f32 %v170_v0, 0.0  ;;  %v559_v0 = vld [vmem:[#allocation2 + $0x180] sm:$0xff] }
  0xa0   :  { %265 = vmatmul.f32.vlgmr.msra.gmra.mxu2 %v175_v1  ;;  %311 = vmatmul.f32.vlgmr.msrb.gmra.mxu0 %v175_v1  ;;  %v560_v1 = vld [vmem:[#allocation2 + $0x188] sm:$0xff] }
  0xa1   :  { %288 = vmatmul.f32.vlgmr.msra.gmra.mxu3 %v176_v2  ;;  %334 = vmatmul.f32.vlgmr.msrb.gmra.mxu1 %v176_v2 }
  0xa2   :  { %604 = vmatpush.msra.mxu3 %v573_v33  ;;  %650 = vmatpush.msrb.mxu1 %v574_v34  ;;  %v552_v33 = vld [vmem:[#allocation2 + $0x148] sm:$0xff]  ;;  %v523_v34 = vld [vmem:[#allocation2 + $0x60] sm:$0xff] }
  0xa3   :  { %v149_v5 = vpop.f32.mrf.mxu0  ;;  %581 = vmatpush.msra.mxu2 %v541_v39  ;;  %627 = vmatpush.msrb.mxu0 %v542_v40  ;;  %v547_v39 = vld [vmem:[#allocation2 + $0x120] sm:$0xff]  ;;  %v522_v40 = vld [vmem:[#allocation2 + $0x58] sm:$0xff] }
  0xa4   :  { %v172_v6 = vpop.f32.mrf.mxu1  ;;  %v150_v7 = vadd.f32 %v149_v5, %v118_v51  ;;  %605 = vmatpush.msra.mxu3 %v571_v35  ;;  %651 = vmatpush.msrb.mxu1 %v572_v36  ;;  %v536_v51 = vld [vmem:[#allocation2 + $0xc8] sm:$0xff]  ;;  %v558_v5 = vld [vmem:[#allocation2 + $0x178] sm:$0xff]  ;;  %v549_v35 = vld [vmem:[#allocation2 + $0x130] sm:$0xff] }
  0xa5   :  { %v173_v8 = vadd.f32 %v172_v6, %v119_v52  ;;  %582 = vmatpush.msra.mxu2 %v539_v41  ;;  %628 = vmatpush.msrb.mxu0 %v540_v44  ;;  %v246_v52 = vperm.slane %v1773_v45, 1  ;;  %v524_v36 = vld [vmem:[#allocation2 + $0x68] sm:$0xff]  ;;  %v546_v45 = vld [vmem:[#allocation2 + $0x118] sm:$0xff] }
  0xa6   :  { %v177_v9 = vmax.f32 %v150_v7, 0.0  ;;  %606 = vmatpush.msra.mxu3 %v569_v37  ;;  %652 = vmatpush.msrb.mxu1 %v570_v38  ;;  %v550_v37 = vld [vmem:[#allocation2 + $0x138] sm:$0xff]  ;;  %v521_v38 = vld [vmem:[#allocation2 + $0x50] sm:$0xff]  ;;  %v548_v41 = vld [vmem:[#allocation2 + $0x128] sm:$0xff] }
  0xa7   :  { %v178_v10 = vmax.f32 %v173_v8, 0.0  ;;  %583 = vmatpush.msra.mxu2 %v537_v46  ;;  %629 = vmatpush.msrb.mxu0 %v538_v47  ;;  %v520_v44 = vld [vmem:[#allocation2 + $0x48] sm:$0xff]  ;;  %v517_v46 = vld [vmem:[#allocation2 + $0x30] sm:$0xff]  ;;  %v543_v47 = vld [vmem:[#allocation2 + $0x100] sm:$0xff] }
  0xa8   :  { %268 = vmatmul.f32.gmra.mxu2 %v177_v9  ;;  %314 = vmatmul.f32.gmra.mxu0 %v177_v9 }
  0xa9   :  { %291 = vmatmul.f32.gmra.mxu3 %v178_v10  ;;  %337 = vmatmul.f32.gmra.mxu1 %v178_v10 }
  0xaa   :  { %607 = vmatpush.msra.mxu3 %v567_v42  ;;  %653 = vmatpush.msrb.mxu1 %v568_v43  ;;  %v519_v42 = vld [vmem:[#allocation2 + $0x40] sm:$0xff]  ;;  %v545_v43 = vld [vmem:[#allocation2 + $0x110] sm:$0xff] }
  0xab   :  { %584 = vmatpush.msra.mxu2 %v535_v50  ;;  %630 = vmatpush.msrb.mxu0 %v536_v51  ;;  %v515_v50 = vld [vmem:[#allocation2 + $0x20] sm:$0xff]  ;;  %v516_v51 = vld [vmem:[#allocation2 + $0x28] sm:$0xff] }
  0xac   :  { %608 = vmatpush.msra.mxu3 %v565_v48  ;;  %654 = vmatpush.msrb.mxu1 %v566_v49  ;;  %v518_v48 = vld [vmem:[#allocation2 + $0x38] sm:$0xff]  ;;  %v544_v49 = vld [vmem:[#allocation2 + $0x108] sm:$0xff] }
  0xad   :  { %585 = vmatpush.msra.mxu2 %v533_v55  ;;  %631 = vmatpush.msrb.mxu0 %v534_v56  ;;  %v512_v55 = vld [vmem:[#allocation2 + $0x8] sm:$0xff]  ;;  %v739_v56 = vld [vmem:[#allocation5 + $0x1f0] sm:$0xff] }
  0xae   :  { %609 = vmatpush.msra.mxu3 %v563_v53  ;;  %655 = vmatpush.msrb.mxu1 %v564_v54  ;;  %v514_v53 = vld [vmem:[#allocation2 + $0x18] sm:$0xff]  ;;  %v511_v54 = vld [vmem:[#allocation2] sm:$0xff] }
  0xaf   :  { %586 = vmatpush.msra.mxu2 %v531_v60  ;;  %632 = vmatpush.msrb.mxu0 %v532_v61  ;;  %v735_v60 = vld [vmem:[#allocation5 + $0x1d0] sm:$0xff]  ;;  %v736_v61 = vld [vmem:[#allocation5 + $0x1d8] sm:$0xff] }
  0xb0   :  { %610 = vmatpush.msra.mxu3 %v561_v57  ;;  %656 = vmatpush.msrb.mxu1 %v562_v58  ;;  %v740_v57 = vld [vmem:[#allocation5 + $0x1f8] sm:$0xff]  ;;  %v737_v58 = vld [vmem:[#allocation5 + $0x1e0] sm:$0xff] }
  0xb1   :  { %587 = vmatpush.msra.mxu2 %v529_v22  ;;  %633 = vmatpush.msrb.mxu0 %v530_v24  ;;  %v726_v24 = vld [vmem:[#allocation5 + $0x188] sm:$0xff] }
  0xb2   :  { %611 = vmatpush.msra.mxu3 %v559_v0  ;;  %657 = vmatpush.msrb.mxu1 %v560_v1  ;;  %v705_v0 = vld [vmem:[#allocation5 + $0xe0] sm:$0xff] }
  0xb3   :  { %588 = vmatpush.msra.mxu2 %v527_v26  ;;  %634 = vmatpush.msrb.mxu0 %v528_v28  ;;  %v733_v1 = vld [vmem:[#allocation5 + $0x1c0] sm:$0xff]  ;;  %v724_v28 = vld [vmem:[#allocation5 + $0x178] sm:$0xff] }
  0xb4   :  { %612 = vmatpush.msra.mxu3 %v557_v4  ;;  %658 = vmatpush.msrb.mxu1 %v558_v5  ;;  %v1780_v4 = vld [vmem:[%s1905_s6] sm:$0x3]  ;;  %v703_v5 = vld [vmem:[#allocation5 + $0xd0] sm:$0xff] }
  0xb5   :  { %589 = vmatpush.msra.mxu2 %v525_v30  ;;  %635 = vmatpush.msrb.mxu0 %v526_v32  ;;  %v411_v26 = vperm.slane %v1780_v4, 0 }
  0xb6   :  { %613 = vmatpush.msra.mxu3 %v555_v23  ;;  %659 = vmatpush.msrb.mxu1 %v556_v25  ;;  %v725_v23 = vld [vmem:[#allocation5 + $0x180] sm:$0xff] }
  0xb7   :  { %590 = vmatpush.msra.mxu2 %v523_v34  ;;  %636 = vmatpush.msrb.mxu0 %v524_v36 }
  0xb8   :  { %614 = vmatpush.msra.mxu3 %v553_v27  ;;  %660 = vmatpush.msrb.mxu1 %v554_v29  ;;  %v723_v27 = vld [vmem:[#allocation5 + $0x170] sm:$0xff] }
  0xb9   :  { %591 = vmatpush.msra.mxu2 %v521_v38  ;;  %637 = vmatpush.msrb.mxu0 %v522_v40 }
  0xba   :  { %615 = vmatpush.msra.mxu3 %v551_v31  ;;  %661 = vmatpush.msrb.mxu1 %v552_v33 }
  0xbb   :  { %592 = vmatpush.msra.mxu2 %v519_v42  ;;  %638 = vmatpush.msrb.mxu0 %v520_v44 }
  0xbc   :  { %616 = vmatpush.msra.mxu3 %v549_v35  ;;  %662 = vmatpush.msrb.mxu1 %v550_v37 }
  0xbd   :  { %593 = vmatpush.msra.mxu2 %v517_v46  ;;  %639 = vmatpush.msrb.mxu0 %v518_v48  ;;  %v721_v46 = vld [vmem:[#allocation5 + $0x160] sm:$0xff]  ;;  %v722_v48 = vld [vmem:[#allocation5 + $0x168] sm:$0xff] }
  0xbe   :  { %617 = vmatpush.msra.mxu3 %v547_v39  ;;  %663 = vmatpush.msrb.mxu1 %v548_v41 }
  0xbf   :  { %594 = vmatpush.msra.mxu2 %v515_v50  ;;  %640 = vmatpush.msrb.mxu0 %v516_v51  ;;  %v719_v50 = vld [vmem:[#allocation5 + $0x150] sm:$0xff]  ;;  %v694_v51 = vld [vmem:[#allocation5 + $0x88] sm:$0xff] }
  0xc0   :  { %618 = vmatpush.msra.mxu3 %v545_v43  ;;  %664 = vmatpush.msrb.mxu1 %v546_v45  ;;  %v695_v45 = vld [vmem:[#allocation5 + $0x90] sm:$0xff] }
  0xc1   :  { %641 = vmatpush.msrb.mxu0 %v514_v53  ;;  %v691_v53 = vld [vmem:[#allocation5 + $0x70] sm:$0xff] }
  0xc2   :  { %619 = vmatpush.msra.mxu3 %v543_v47  ;;  %665 = vmatpush.msrb.mxu1 %v544_v49  ;;  %v696_v47 = vld [vmem:[#allocation5 + $0x98] sm:$0xff]  ;;  %v693_v49 = vld [vmem:[#allocation5 + $0x80] sm:$0xff] }
  0xc3   :  { %642 = vmatpush.msrb.mxu0 %v512_v55  ;;  %v692_v55 = vld [vmem:[#allocation5 + $0x78] sm:$0xff] }
 0x11d   :  { %v312_v59 = vpop.f32.mrf.mxu0 }
 0x11e   :  { %v313_v62 = vadd.f32 %v312_v59, %v246_v52  ;;  %v335_v63 = vpop.f32.mrf.mxu1  ;;  %v738_v59 = vld [vmem:[#allocation5 + $0x1e8] sm:$0xff] }
 0x120   :  { %v336_v2 = vadd.f32 %v335_v63, %v313_v62  ;;  %v707_v62 = vld [vmem:[#allocation5 + $0xf0] sm:$0xff]  ;;  %v708_v63 = vld [vmem:[#allocation5 + $0xf8] sm:$0xff] }
 0x122   :  { %v342_v6 = vmax.f32 %v336_v2, 0.0  ;;  %v734_v2 = vld [vmem:[#allocation5 + $0x1c8] sm:$0xff] }
 0x123   :  { %v266_v7 = vpop.f32.mrf.mxu2 }
 0x124   :  { %v267_v8 = vadd.f32 %v266_v7, %v245_v3  ;;  %454 = vmatmul.f32.vlgmr.msrb.gmra.mxu3 %v342_v6  ;;  %500 = vmatmul.f32.vlgmr.msra.gmra.mxu1 %v342_v6  ;;  %v289_v9 = vpop.f32.mrf.mxu3  ;;  %v704_v6 = vld [vmem:[#allocation5 + $0xd8] sm:$0xff]  ;;  %v731_v7 = vld [vmem:[#allocation5 + $0x1b0] sm:$0xff] }
 0x125   :  { %v315_v10 = vpop.f32.mrf.mxu0  ;;  %770 = vmatpush.msrb.mxu3 %v739_v56  ;;  %816 = vmatpush.msra.mxu1 %v740_v57  ;;  %v718_v56 = vld [vmem:[#allocation5 + $0x148] sm:$0xff]  ;;  %v689_v57 = vld [vmem:[#allocation5 + $0x60] sm:$0xff] }
 0x126   :  { %v290_v11 = vadd.f32 %v289_v9, %v267_v8  ;;  %v316_v12 = vadd.f32 %v315_v10, %v246_v52  ;;  %v338_v13 = vpop.f32.mrf.mxu1  ;;  %v513_v52 = vld [vmem:[#allocation2 + $0x10] sm:$0xff]  ;;  %v732_v8 = vld [vmem:[#allocation5 + $0x1b8] sm:$0xff]  ;;  %v701_v9 = vld [vmem:[#allocation5 + $0xc0] sm:$0xff] }
 0x127   :  { %595 = vmatpush.msra.mxu2 %v513_v52  ;;  %771 = vmatpush.msrb.mxu3 %v737_v58  ;;  %v702_v10 = vld [vmem:[#allocation5 + $0xc8] sm:$0xff]  ;;  %v720_v52 = vld [vmem:[#allocation5 + $0x158] sm:$0xff]  ;;  %v715_v58 = vld [vmem:[#allocation5 + $0x130] sm:$0xff] }
 0x128   :  { %v341_v14 = vmax.f32 %v290_v11, 0.0  ;;  %v339_v15 = vadd.f32 %v338_v13, %v316_v12  ;;  %817 = vmatpush.msra.mxu1 %v738_v59  ;;  %v412_v11 = vperm.slane %v1780_v4, 1  ;;  %v729_v12 = vld [vmem:[#allocation5 + $0x1a0] sm:$0xff]  ;;  %v730_v13 = vld [vmem:[#allocation5 + $0x1a8] sm:$0xff]  ;;  %v712_v4 = vld [vmem:[#allocation5 + $0x118] sm:$0xff] }
 0x129   :  { %596 = vmatpush.msra.mxu2 %v511_v54  ;;  %772 = vmatpush.msrb.mxu3 %v735_v60  ;;  %v717_v54 = vld [vmem:[#allocation5 + $0x140] sm:$0xff]  ;;  %v690_v59 = vld [vmem:[#allocation5 + $0x68] sm:$0xff]  ;;  %v716_v60 = vld [vmem:[#allocation5 + $0x138] sm:$0xff] }
 0x12a   :  { %v344_v16 = vmax.f32 %v339_v15, 0.0  ;;  %431 = vmatmul.f32.vlgmr.msrb.gmra.mxu2 %v341_v14  ;;  %477 = vmatmul.f32.vlgmr.msra.gmra.mxu0 %v341_v14  ;;  %v699_v14 = vld [vmem:[#allocation5 + $0xb0] sm:$0xff]  ;;  %v700_v15 = vld [vmem:[#allocation5 + $0xb8] sm:$0xff] }
 0x12b   :  { %v269_v17 = vpop.f32.mrf.mxu2  ;;  %747 = vmatpush.msrb.mxu2 %v707_v62  ;;  %793 = vmatpush.msra.mxu0 %v708_v63  ;;  %v713_v62 = vld [vmem:[#allocation5 + $0x120] sm:$0xff]  ;;  %v688_v63 = vld [vmem:[#allocation5 + $0x58] sm:$0xff] }
 0x12c   :  { %v270_v18 = vadd.f32 %v269_v17, %v245_v3  ;;  %457 = vmatmul.f32.gmra.mxu3 %v344_v16  ;;  %503 = vmatmul.f32.gmra.mxu1 %v344_v16  ;;  %v292_v19 = vpop.f32.mrf.mxu3  ;;  %v706_v3 = vld [vmem:[#allocation5 + $0xe8] sm:$0xff]  ;;  %v727_v16 = vld [vmem:[#allocation5 + $0x190] sm:$0xff]  ;;  %v728_v17 = vld [vmem:[#allocation5 + $0x198] sm:$0xff] }
 0x12d   :  { %818 = vmatpush.msra.mxu1 %v736_v61  ;;  %748 = vmatpush.msrb.mxu2 %v705_v0  ;;  %v687_v61 = vld [vmem:[#allocation5 + $0x50] sm:$0xff]  ;;  %v714_v0 = vld [vmem:[#allocation5 + $0x128] sm:$0xff] }
 0x12e   :  { %v293_v20 = vadd.f32 %v292_v19, %v270_v18  ;;  %794 = vmatpush.msra.mxu0 %v706_v3  ;;  %773 = vmatpush.msrb.mxu3 %v733_v1  ;;  %v685_v1 = vld [vmem:[#allocation5 + $0x40] sm:$0xff]  ;;  %v686_v3 = vld [vmem:[#allocation5 + $0x48] sm:$0xff] }
 0x12f   :  { %819 = vmatpush.msra.mxu1 %v734_v2  ;;  %749 = vmatpush.msrb.mxu2 %v703_v5  ;;  %v711_v2 = vld [vmem:[#allocation5 + $0x110] sm:$0xff] }
 0x130   :  { %v343_v21 = vmax.f32 %v293_v20, 0.0  ;;  %795 = vmatpush.msra.mxu0 %v704_v6  ;;  %774 = vmatpush.msrb.mxu3 %v731_v7  ;;  %v697_v20 = vld [vmem:[#allocation5 + $0xa0] sm:$0xff]  ;;  %v683_v5 = vld [vmem:[#allocation5 + $0x30] sm:$0xff]  ;;  %v684_v7 = vld [vmem:[#allocation5 + $0x38] sm:$0xff] }
 0x131   :  { %820 = vmatpush.msra.mxu1 %v732_v8  ;;  %750 = vmatpush.msrb.mxu2 %v701_v9  ;;  %v709_v6 = vld [vmem:[#allocation5 + $0x100] sm:$0xff]  ;;  %v710_v8 = vld [vmem:[#allocation5 + $0x108] sm:$0xff] }
 0x132   :  { %434 = vmatmul.f32.gmra.mxu2 %v343_v21  ;;  %480 = vmatmul.f32.gmra.mxu0 %v343_v21  ;;  %v698_v21 = vld [vmem:[#allocation5 + $0xa8] sm:$0xff]  ;;  %v681_v9 = vld [vmem:[#allocation5 + $0x20] sm:$0xff] }
 0x133   :  { %796 = vmatpush.msra.mxu0 %v702_v10  ;;  %775 = vmatpush.msrb.mxu3 %v729_v12  ;;  %v682_v10 = vld [vmem:[#allocation5 + $0x28] sm:$0xff]  ;;  %v680_v12 = vld [vmem:[#allocation5 + $0x18] sm:$0xff] }
 0x134   :  { %821 = vmatpush.msra.mxu1 %v730_v13  ;;  %751 = vmatpush.msrb.mxu2 %v699_v14  ;;  %v677_v13 = vld [vmem:[#allocation5] sm:$0xff]  ;;  %v678_v14 = vld [vmem:[#allocation5 + $0x8] sm:$0xff] }
 0x135   :  { %797 = vmatpush.msra.mxu0 %v700_v15  ;;  %776 = vmatpush.msrb.mxu3 %v727_v16  ;;  %v905_v15 = vld [vmem:[#allocation7 + $0x1f0] sm:$0xff]  ;;  %v906_v16 = vld [vmem:[#allocation7 + $0x1f8] sm:$0xff] }
 0x136   :  { %822 = vmatpush.msra.mxu1 %v728_v17  ;;  %752 = vmatpush.msrb.mxu2 %v697_v20  ;;  %v903_v17 = vld [vmem:[#allocation7 + $0x1e0] sm:$0xff]  ;;  %v902_v20 = vld [vmem:[#allocation7 + $0x1d8] sm:$0xff] }
 0x137   :  { %798 = vmatpush.msra.mxu0 %v698_v21  ;;  %777 = vmatpush.msrb.mxu3 %v725_v23  ;;  %v873_v21 = vld [vmem:[#allocation7 + $0xf0] sm:$0xff]  ;;  %v871_v23 = vld [vmem:[#allocation7 + $0xe0] sm:$0xff] }
 0x138   :  { %823 = vmatpush.msra.mxu1 %v726_v24  ;;  %753 = vmatpush.msrb.mxu2 %v695_v45  ;;  %v899_v24 = vld [vmem:[#allocation7 + $0x1c0] sm:$0xff] }
 0x139   :  { %778 = vmatpush.msrb.mxu3 %v723_v27  ;;  %799 = vmatpush.msra.mxu0 %v696_v47  ;;  %v1787_v27 = vld [vmem:[%s1907_s8] sm:$0x3]  ;;  %v892_v47 = vld [vmem:[#allocation7 + $0x188] sm:$0xff] }
 0x13a   :  { %824 = vmatpush.msra.mxu1 %v724_v28  ;;  %754 = vmatpush.msrb.mxu2 %v693_v49  ;;  %v869_v28 = vld [vmem:[#allocation7 + $0xd0] sm:$0xff]  ;;  %v577_v49 = vperm.slane %v1787_v27, 0 }
 0x13b   :  { %779 = vmatpush.msrb.mxu3 %v721_v46  ;;  %800 = vmatpush.msra.mxu0 %v694_v51  ;;  %v891_v46 = vld [vmem:[#allocation7 + $0x180] sm:$0xff]  ;;  %v890_v51 = vld [vmem:[#allocation7 + $0x178] sm:$0xff] }
 0x13c   :  { %825 = vmatpush.msra.mxu1 %v722_v48  ;;  %755 = vmatpush.msrb.mxu2 %v691_v53 }
 0x13d   :  { %780 = vmatpush.msrb.mxu3 %v719_v50  ;;  %801 = vmatpush.msra.mxu0 %v692_v55  ;;  %v889_v50 = vld [vmem:[#allocation7 + $0x170] sm:$0xff] }
 0x13e   :  { %826 = vmatpush.msra.mxu1 %v720_v52  ;;  %756 = vmatpush.msrb.mxu2 %v689_v57 }
 0x13f   :  { %781 = vmatpush.msrb.mxu3 %v717_v54  ;;  %802 = vmatpush.msra.mxu0 %v690_v59 }
 0x140   :  { %827 = vmatpush.msra.mxu1 %v718_v56  ;;  %757 = vmatpush.msrb.mxu2 %v687_v61 }
 0x141   :  { %782 = vmatpush.msrb.mxu3 %v715_v58  ;;  %803 = vmatpush.msra.mxu0 %v688_v63 }
 0x142   :  { %828 = vmatpush.msra.mxu1 %v716_v60  ;;  %758 = vmatpush.msrb.mxu2 %v685_v1 }
 0x143   :  { %783 = vmatpush.msrb.mxu3 %v713_v62  ;;  %804 = vmatpush.msra.mxu0 %v686_v3 }
 0x144   :  { %829 = vmatpush.msra.mxu1 %v714_v0  ;;  %759 = vmatpush.msrb.mxu2 %v683_v5  ;;  %v887_v5 = vld [vmem:[#allocation7 + $0x160] sm:$0xff] }
 0x145   :  { %784 = vmatpush.msrb.mxu3 %v711_v2  ;;  %805 = vmatpush.msra.mxu0 %v684_v7  ;;  %v888_v7 = vld [vmem:[#allocation7 + $0x168] sm:$0xff] }
 0x146   :  { %830 = vmatpush.msra.mxu1 %v712_v4  ;;  %760 = vmatpush.msrb.mxu2 %v681_v9  ;;  %v861_v4 = vld [vmem:[#allocation7 + $0x90] sm:$0xff] }
 0x147   :  { %785 = vmatpush.msrb.mxu3 %v709_v6  ;;  %806 = vmatpush.msra.mxu0 %v682_v10  ;;  %v862_v6 = vld [vmem:[#allocation7 + $0x98] sm:$0xff]  ;;  %v885_v9 = vld [vmem:[#allocation7 + $0x150] sm:$0xff]  ;;  %v860_v10 = vld [vmem:[#allocation7 + $0x88] sm:$0xff] }
 0x148   :  { %831 = vmatpush.msra.mxu1 %v710_v8  ;;  %v859_v8 = vld [vmem:[#allocation7 + $0x80] sm:$0xff] }
 0x149   :  { %807 = vmatpush.msra.mxu0 %v680_v12  ;;  %v857_v12 = vld [vmem:[#allocation7 + $0x70] sm:$0xff] }
 0x14b   :  { %808 = vmatpush.msra.mxu0 %v678_v14  ;;  %v858_v14 = vld [vmem:[#allocation7 + $0x78] sm:$0xff] }
 0x1a1   :  { %v501_v18 = vpop.f32.mrf.mxu1 }
 0x1a7   :  { %v478_v19 = vpop.f32.mrf.mxu0  ;;  %v455_v30 = vpop.f32.mrf.mxu3 }
 0x1a8   :  { %v479_v22 = vadd.f32 %v478_v19, %v412_v11  ;;  %v901_v19 = vld [vmem:[#allocation7 + $0x1d0] sm:$0xff] }
 0x1a9   :  { %v504_v36 = vpop.f32.mrf.mxu1 }
 0x1aa   :  { %v502_v25 = vadd.f32 %v501_v18, %v479_v22  ;;  %v904_v18 = vld [vmem:[#allocation7 + $0x1e8] sm:$0xff]  ;;  %v874_v22 = vld [vmem:[#allocation7 + $0xf8] sm:$0xff] }
 0x1ac   :  { %v508_v29 = vmax.f32 %v502_v25, 0.0  ;;  %v900_v25 = vld [vmem:[#allocation7 + $0x1c8] sm:$0xff] }
 0x1ad   :  { %v432_v31 = vpop.f32.mrf.mxu2 }
 0x1ae   :  { %v433_v32 = vadd.f32 %v432_v31, %v411_v26  ;;  %620 = vmatmul.f32.vlgmr.msra.gmra.mxu3 %v508_v29  ;;  %666 = vmatmul.f32.vlgmr.msrb.gmra.mxu1 %v508_v29  ;;  %v870_v29 = vld [vmem:[#allocation7 + $0xd8] sm:$0xff] }
 0x1af   :  { %v481_v33 = vpop.f32.mrf.mxu0  ;;  %v458_v42 = vpop.f32.mrf.mxu3  ;;  %936 = vmatpush.msra.mxu3 %v905_v15  ;;  %982 = vmatpush.msrb.mxu1 %v906_v16  ;;  %v898_v31 = vld [vmem:[#allocation7 + $0x1b8] sm:$0xff]  ;;  %v884_v15 = vld [vmem:[#allocation7 + $0x148] sm:$0xff]  ;;  %v855_v16 = vld [vmem:[#allocation7 + $0x60] sm:$0xff] }
 0x1b0   :  { %v456_v34 = vadd.f32 %v455_v30, %v433_v32  ;;  %v482_v35 = vadd.f32 %v481_v33, %v412_v11  ;;  %v679_v11 = vld [vmem:[#allocation5 + $0x10] sm:$0xff]  ;;  %v867_v32 = vld [vmem:[#allocation7 + $0xc0] sm:$0xff]  ;;  %v868_v33 = vld [vmem:[#allocation7 + $0xc8] sm:$0xff] }
 0x1b1   :  { %761 = vmatpush.msrb.mxu2 %v679_v11  ;;  %937 = vmatpush.msra.mxu3 %v903_v17  ;;  %v897_v30 = vld [vmem:[#allocation7 + $0x1b0] sm:$0xff]  ;;  %v886_v11 = vld [vmem:[#allocation7 + $0x158] sm:$0xff] }
 0x1b2   :  { %v507_v37 = vmax.f32 %v456_v34, 0.0  ;;  %v505_v38 = vadd.f32 %v504_v36, %v482_v35  ;;  %983 = vmatpush.msrb.mxu1 %v904_v18  ;;  %v578_v34 = vperm.slane %v1787_v27, 1  ;;  %v895_v35 = vld [vmem:[#allocation7 + $0x1a0] sm:$0xff]  ;;  %v896_v36 = vld [vmem:[#allocation7 + $0x1a8] sm:$0xff]  ;;  %v881_v17 = vld [vmem:[#allocation7 + $0x130] sm:$0xff] }
 0x1b3   :  { %762 = vmatpush.msrb.mxu2 %v677_v13  ;;  %938 = vmatpush.msra.mxu3 %v901_v19  ;;  %v883_v13 = vld [vmem:[#allocation7 + $0x140] sm:$0xff]  ;;  %v856_v18 = vld [vmem:[#allocation7 + $0x68] sm:$0xff]  ;;  %v882_v19 = vld [vmem:[#allocation7 + $0x138] sm:$0xff] }
 0x1b4   :  { %597 = vmatmul.f32.vlgmr.msra.gmra.mxu2 %v507_v37  ;;  %643 = vmatmul.f32.vlgmr.msrb.gmra.mxu0 %v507_v37  ;;  %v510_v39 = vmax.f32 %v505_v38, 0.0  ;;  %v865_v37 = vld [vmem:[#allocation7 + $0xb0] sm:$0xff]  ;;  %v866_v38 = vld [vmem:[#allocation7 + $0xb8] sm:$0xff] }
 0x1b5   :  { %v435_v40 = vpop.f32.mrf.mxu2  ;;  %913 = vmatpush.msra.mxu2 %v873_v21  ;;  %959 = vmatpush.msrb.mxu0 %v874_v22  ;;  %v879_v21 = vld [vmem:[#allocation7 + $0x120] sm:$0xff]  ;;  %v854_v22 = vld [vmem:[#allocation7 + $0x58] sm:$0xff] }
 0x1b6   :  { %v436_v41 = vadd.f32 %v435_v40, %v411_v26  ;;  %623 = vmatmul.f32.gmra.mxu3 %v510_v39  ;;  %669 = vmatmul.f32.gmra.mxu1 %v510_v39  ;;  %v872_v26 = vld [vmem:[#allocation7 + $0xe8] sm:$0xff]  ;;  %v893_v39 = vld [vmem:[#allocation7 + $0x190] sm:$0xff]  ;;  %v894_v40 = vld [vmem:[#allocation7 + $0x198] sm:$0xff] }
 0x1b7   :  { %984 = vmatpush.msrb.mxu1 %v902_v20  ;;  %914 = vmatpush.msra.mxu2 %v871_v23  ;;  %v853_v20 = vld [vmem:[#allocation7 + $0x50] sm:$0xff]  ;;  %v880_v23 = vld [vmem:[#allocation7 + $0x128] sm:$0xff]  ;;  %v878_v27 = vld [vmem:[#allocation7 + $0x118] sm:$0xff] }
 0x1b8   :  { %v459_v43 = vadd.f32 %v458_v42, %v436_v41  ;;  %960 = vmatpush.msrb.mxu0 %v872_v26  ;;  %939 = vmatpush.msra.mxu3 %v899_v24  ;;  %v851_v24 = vld [vmem:[#allocation7 + $0x40] sm:$0xff]  ;;  %v852_v26 = vld [vmem:[#allocation7 + $0x48] sm:$0xff] }
 0x1b9   :  { %985 = vmatpush.msrb.mxu1 %v900_v25  ;;  %915 = vmatpush.msra.mxu2 %v869_v28  ;;  %v877_v25 = vld [vmem:[#allocation7 + $0x110] sm:$0xff] }
 0x1ba   :  { %v509_v44 = vmax.f32 %v459_v43, 0.0  ;;  %961 = vmatpush.msrb.mxu0 %v870_v29  ;;  %940 = vmatpush.msra.mxu3 %v897_v30  ;;  %v863_v43 = vld [vmem:[#allocation7 + $0xa0] sm:$0xff]  ;;  %v849_v28 = vld [vmem:[#allocation7 + $0x30] sm:$0xff]  ;;  %v850_v30 = vld [vmem:[#allocation7 + $0x38] sm:$0xff] }
 0x1bb   :  { %986 = vmatpush.msrb.mxu1 %v898_v31  ;;  %916 = vmatpush.msra.mxu2 %v867_v32  ;;  %v875_v29 = vld [vmem:[#allocation7 + $0x100] sm:$0xff]  ;;  %v876_v31 = vld [vmem:[#allocation7 + $0x108] sm:$0xff] }
 0x1bc   :  { %600 = vmatmul.f32.gmra.mxu2 %v509_v44  ;;  %646 = vmatmul.f32.gmra.mxu0 %v509_v44  ;;  %v864_v44 = vld [vmem:[#allocation7 + $0xa8] sm:$0xff]  ;;  %v847_v32 = vld [vmem:[#allocation7 + $0x20] sm:$0xff] }
 0x1bd   :  { %962 = vmatpush.msrb.mxu0 %v868_v33  ;;  %941 = vmatpush.msra.mxu3 %v895_v35  ;;  %v848_v33 = vld [vmem:[#allocation7 + $0x28] sm:$0xff]  ;;  %v846_v35 = vld [vmem:[#allocation7 + $0x18] sm:$0xff] }
 0x1be   :  { %987 = vmatpush.msrb.mxu1 %v896_v36  ;;  %917 = vmatpush.msra.mxu2 %v865_v37  ;;  %v843_v36 = vld [vmem:[#allocation7] sm:$0xff]  ;;  %v844_v37 = vld [vmem:[#allocation7 + $0x8] sm:$0xff] }
 0x1bf   :  { %963 = vmatpush.msrb.mxu0 %v866_v38  ;;  %942 = vmatpush.msra.mxu3 %v893_v39  ;;  %v1040_v38 = vld [vmem:[%s1912_s13 + $0xf8] sm:$0xff]  ;;  %v1039_v39 = vld [vmem:[%s1912_s13 + $0xf0] sm:$0xff] }
 0x1c0   :  { %988 = vmatpush.msrb.mxu1 %v894_v40  ;;  %918 = vmatpush.msra.mxu2 %v863_v43  ;;  %v1024_v40 = vld [vmem:[%s1912_s13 + $0x78] sm:$0xff]  ;;  %v1022_v43 = vld [vmem:[%s1912_s13 + $0x68] sm:$0xff] }
 0x1c1   :  { %964 = vmatpush.msrb.mxu0 %v864_v44  ;;  %943 = vmatpush.msra.mxu3 %v891_v46  ;;  %v1037_v44 = vld [vmem:[%s1912_s13 + $0xe0] sm:$0xff] }
 0x1c2   :  { %989 = vmatpush.msrb.mxu1 %v892_v47  ;;  %919 = vmatpush.msra.mxu2 %v861_v4  ;;  %v1021_v46 = vld [vmem:[%s1912_s13 + $0x60] sm:$0xff]  ;;  %v1036_v47 = vld [vmem:[%s1912_s13 + $0xd8] sm:$0xff] }
 0x1c3   :  { %944 = vmatpush.msra.mxu3 %v889_v50  ;;  %965 = vmatpush.msrb.mxu0 %v862_v6  ;;  %v1035_v50 = vld [vmem:[%s1912_s13 + $0xd0] sm:$0xff] }
 0x1c4   :  { %990 = vmatpush.msrb.mxu1 %v890_v51  ;;  %920 = vmatpush.msra.mxu2 %v859_v8  ;;  %v1019_v51 = vld [vmem:[%s1912_s13 + $0x50] sm:$0xff] }
 0x1c5   :  { %945 = vmatpush.msra.mxu3 %v887_v5  ;;  %966 = vmatpush.msrb.mxu0 %v860_v10 }
 0x1c6   :  { %991 = vmatpush.msrb.mxu1 %v888_v7  ;;  %921 = vmatpush.msra.mxu2 %v857_v12  ;;  %v1018_v12 = vld [vmem:[%s1912_s13 + $0x48] sm:$0xff] }
 0x1c7   :  { %946 = vmatpush.msra.mxu3 %v885_v9  ;;  %967 = vmatpush.msrb.mxu0 %v858_v14  ;;  %v1017_v14 = vld [vmem:[%s1912_s13 + $0x40] sm:$0xff] }
 0x1c8   :  { %992 = vmatpush.msrb.mxu1 %v886_v11  ;;  %922 = vmatpush.msra.mxu2 %v855_v16  ;;  %v1016_v16 = vld [vmem:[%s1912_s13 + $0x38] sm:$0xff] }
 0x1c9   :  { %947 = vmatpush.msra.mxu3 %v883_v13  ;;  %968 = vmatpush.msrb.mxu0 %v856_v18  ;;  %v1031_v13 = vld [vmem:[%s1912_s13 + $0xb0] sm:$0xff] }
 0x1ca   :  { %993 = vmatpush.msrb.mxu1 %v884_v15  ;;  %923 = vmatpush.msra.mxu2 %v853_v20  ;;  %v1030_v15 = vld [vmem:[%s1912_s13 + $0xa8] sm:$0xff]  ;;  %v1015_v18 = vld [vmem:[%s1912_s13 + $0x30] sm:$0xff] }
 0x1cb   :  { %948 = vmatpush.msra.mxu3 %v881_v17  ;;  %969 = vmatpush.msrb.mxu0 %v854_v22  ;;  %v1029_v17 = vld [vmem:[%s1912_s13 + $0xa0] sm:$0xff]  ;;  %v1014_v20 = vld [vmem:[%s1912_s13 + $0x28] sm:$0xff] }
 0x1cc   :  { %994 = vmatpush.msrb.mxu1 %v882_v19  ;;  %924 = vmatpush.msra.mxu2 %v851_v24  ;;  %v1028_v19 = vld [vmem:[%s1912_s13 + $0x98] sm:$0xff]  ;;  %v1013_v22 = vld [vmem:[%s1912_s13 + $0x20] sm:$0xff] }
 0x1cd   :  { %949 = vmatpush.msra.mxu3 %v879_v21  ;;  %970 = vmatpush.msrb.mxu0 %v852_v26  ;;  %v1027_v21 = vld [vmem:[%s1912_s13 + $0x90] sm:$0xff]  ;;  %v1012_v24 = vld [vmem:[%s1912_s13 + $0x18] sm:$0xff] }
 0x1ce   :  { %995 = vmatpush.msrb.mxu1 %v880_v23  ;;  %925 = vmatpush.msra.mxu2 %v849_v28  ;;  %v1026_v23 = vld [vmem:[%s1912_s13 + $0x88] sm:$0xff]  ;;  %v1011_v26 = vld [vmem:[%s1912_s13 + $0x10] sm:$0xff]  ;;  %v1009_v28 = vld [vmem:[%s1912_s13] sm:$0xff] }
 0x1cf   :  { %950 = vmatpush.msra.mxu3 %v877_v25  ;;  %971 = vmatpush.msrb.mxu0 %v850_v30  ;;  %v1025_v25 = vld [vmem:[%s1912_s13 + $0x80] sm:$0xff] }
 0x1d0   :  { %996 = vmatpush.msrb.mxu1 %v878_v27  ;;  %926 = vmatpush.msra.mxu2 %v847_v32  ;;  %v1010_v27 = vld [vmem:[%s1912_s13 + $0x8] sm:$0xff] }
 0x1d1   :  { %951 = vmatpush.msra.mxu3 %v875_v29  ;;  %972 = vmatpush.msrb.mxu0 %v848_v33  ;;  %v907_v29 = vld [vmem:[%s1911_s12] sm:$0x3] }
 0x1d2   :  { %997 = vmatpush.msrb.mxu1 %v876_v31  ;;  %v910_v30 = vperm.slane %v907_v29, 1 }
 0x1d3   :  { %973 = vmatpush.msrb.mxu0 %v846_v35  ;;  %v909_v35 = vperm.slane %v907_v29, 0 }
 0x1d5   :  { %974 = vmatpush.msrb.mxu0 %v844_v37 }
 0x22b   :  { %v667_v41 = vpop.f32.mrf.mxu1 }
 0x231   :  { %v644_v42 = vpop.f32.mrf.mxu0  ;;  %v621_v53 = vpop.f32.mrf.mxu3 }
 0x232   :  { %v645_v45 = vadd.f32 %v644_v42, %v578_v34  ;;  %v1038_v42 = vld [vmem:[%s1912_s13 + $0xe8] sm:$0xff] }
 0x233   :  { %v670_v59 = vpop.f32.mrf.mxu1 }
 0x234   :  { %v668_v48 = vadd.f32 %v667_v41, %v645_v45  ;;  %v1023_v41 = vld [vmem:[%s1912_s13 + $0x70] sm:$0xff]  ;;  %v741_v45 = vld [vmem:[%s1909_s10] sm:$0x3] }
 0x236   :  { %v674_v52 = vmax.f32 %v668_v48, 0.0  ;;  %v1020_v48 = vld [vmem:[%s1912_s13 + $0x58] sm:$0xff] }
 0x237   :  { %v598_v54 = vpop.f32.mrf.mxu2 }
 0x238   :  { %v599_v55 = vadd.f32 %v598_v54, %v577_v49  ;;  %786 = vmatmul.f32.vlgmr.msrb.gmra.mxu3 %v674_v52  ;;  %832 = vmatmul.f32.vlgmr.msra.gmra.mxu1 %v674_v52  ;;  %v1034_v52 = vld [vmem:[%s1912_s13 + $0xc8] sm:$0xff] }
 0x239   :  { %v647_v56 = vpop.f32.mrf.mxu0  ;;  %v624_v1 = vpop.f32.mrf.mxu3  ;;  %1068 = vmatpush.msrb.mxu3 %v1040_v38 }
 0x23a   :  { %v622_v57 = vadd.f32 %v621_v53, %v599_v55  ;;  %v648_v58 = vadd.f32 %v647_v56, %v578_v34  ;;  %v845_v34 = vld [vmem:[#allocation7 + $0x10] sm:$0xff]  ;;  %v1033_v56 = vld [vmem:[%s1912_s13 + $0xc0] sm:$0xff] }
 0x23b   :  { %927 = vmatpush.msra.mxu2 %v845_v34  ;;  %1069 = vmatpush.msrb.mxu3 %v1039_v39 }
 0x23c   :  { %v673_v60 = vmax.f32 %v622_v57, 0.0  ;;  %v671_v61 = vadd.f32 %v670_v59, %v648_v58  ;;  %v743_v58 = vperm.slane %v741_v45, 0  ;;  %v1032_v59 = vld [vmem:[%s1912_s13 + $0xb8] sm:$0xff] }
 0x23d   :  { %928 = vmatpush.msra.mxu2 %v843_v36  ;;  %1070 = vmatpush.msrb.mxu3 %v1038_v42 }
 0x23e   :  { %763 = vmatmul.f32.vlgmr.msrb.gmra.mxu2 %v673_v60  ;;  %809 = vmatmul.f32.vlgmr.msra.gmra.mxu0 %v673_v60  ;;  %v676_v62 = vmax.f32 %v671_v61, 0.0 }
 0x23f   :  { %v601_v63 = vpop.f32.mrf.mxu2  ;;  %1045 = vmatpush.msrb.mxu2 %v1024_v40  ;;  %1071 = vmatpush.msrb.mxu3 %v1037_v44 }
 0x240   :  { %v602_v0 = vadd.f32 %v601_v63, %v577_v49  ;;  %789 = vmatmul.f32.gmra.mxu3 %v676_v62  ;;  %835 = vmatmul.f32.gmra.mxu1 %v676_v62  ;;  %v744_v49 = vperm.slane %v741_v45, 1 }
 0x241   :  { %1046 = vmatpush.msrb.mxu2 %v1023_v41  ;;  %1072 = vmatpush.msrb.mxu3 %v1036_v47 }
 0x242   :  { %v625_v2 = vadd.f32 %v624_v1, %v602_v0 }
 0x243   :  { %1047 = vmatpush.msrb.mxu2 %v1022_v43  ;;  %1073 = vmatpush.msrb.mxu3 %v1035_v50 }
 0x244   :  { %v675_v3 = vmax.f32 %v625_v2, 0.0 }
 0x245   :  { %1048 = vmatpush.msrb.mxu2 %v1021_v46  ;;  %1074 = vmatpush.msrb.mxu3 %v1034_v52  ;;  %v1125_v52 = vld [vmem:[%s1913_s14] ss:$0 sm:$0xff]  ;;  %s1235_s14 = smov 8  }
 0x246   :  { %766 = vmatmul.f32.gmra.mxu2 %v675_v3  ;;  %812 = vmatmul.f32.gmra.mxu0 %v675_v3 }
 0x247   :  { %1049 = vmatpush.msrb.mxu2 %v1020_v48  ;;  %1075 = vmatpush.msrb.mxu3 %v1033_v56 }
 0x249   :  { %1050 = vmatpush.msrb.mxu2 %v1019_v51  ;;  %1076 = vmatpush.msrb.mxu3 %v1032_v59 }
 0x24b   :  { %1051 = vmatpush.msrb.mxu2 %v1018_v12  ;;  %1077 = vmatpush.msrb.mxu3 %v1031_v13 }
 0x24d   :  { %1052 = vmatpush.msrb.mxu2 %v1017_v14  ;;  %1078 = vmatpush.msrb.mxu3 %v1030_v15 }
 0x24f   :  { %1053 = vmatpush.msrb.mxu2 %v1016_v16  ;;  %1079 = vmatpush.msrb.mxu3 %v1029_v17 }
 0x251   :  { %1054 = vmatpush.msrb.mxu2 %v1015_v18  ;;  %1080 = vmatpush.msrb.mxu3 %v1028_v19 }
 0x253   :  { %1055 = vmatpush.msrb.mxu2 %v1014_v20  ;;  %1081 = vmatpush.msrb.mxu3 %v1027_v21 }
 0x255   :  { %1056 = vmatpush.msrb.mxu2 %v1013_v22  ;;  %1082 = vmatpush.msrb.mxu3 %v1026_v23 }
 0x257   :  { %1057 = vmatpush.msrb.mxu2 %v1012_v24  ;;  %1083 = vmatpush.msrb.mxu3 %v1025_v25 }
 0x259   :  { %1058 = vmatpush.msrb.mxu2 %v1011_v26 }
 0x25b   :  { %1059 = vmatpush.msrb.mxu2 %v1010_v27 }
 0x25d   :  { %1060 = vmatpush.msrb.mxu2 %v1009_v28 }
 0x2b5   :  { %v833_v53 = vpop.f32.mrf.mxu1 }
 0x2bb   :  { %v810_v54 = vpop.f32.mrf.mxu0  ;;  %v787_v61 = vpop.f32.mrf.mxu3 }
 0x2bc   :  { %v811_v55 = vadd.f32 %v810_v54, %v744_v49 }
 0x2bd   :  { %v836_v3 = vpop.f32.mrf.mxu1 }
 0x2be   :  { %v834_v57 = vadd.f32 %v833_v53, %v811_v55 }
 0x2c0   :  { %v840_v60 = vmax.f32 %v834_v57, 0.0 }
 0x2c1   :  { %v764_v62 = vpop.f32.mrf.mxu2 }
 0x2c2   :  { %v765_v63 = vadd.f32 %v764_v62, %v743_v58  ;;  %952 = vmatmul.f32.vlgmr.msra.gmra.mxu3 %v840_v60  ;;  %998 = vmatmul.f32.vlgmr.msrb.gmra.mxu1 %v840_v60 }
 0x2c3   :  { %v813_v0 = vpop.f32.mrf.mxu0  ;;  %v790_v9 = vpop.f32.mrf.mxu3 }
 0x2c4   :  { %v788_v1 = vadd.f32 %v787_v61, %v765_v63  ;;  %v814_v2 = vadd.f32 %v813_v0, %v744_v49 }
 0x2c6   :  { %v839_v4 = vmax.f32 %v788_v1, 0.0  ;;  %v837_v5 = vadd.f32 %v836_v3, %v814_v2 }
 0x2c8   :  { %929 = vmatmul.f32.vlgmr.msra.gmra.mxu2 %v839_v4  ;;  %975 = vmatmul.f32.vlgmr.msrb.gmra.mxu0 %v839_v4  ;;  %v842_v6 = vmax.f32 %v837_v5, 0.0 }
 0x2c9   :  { %v767_v7 = vpop.f32.mrf.mxu2 }
 0x2ca   :  { %v768_v8 = vadd.f32 %v767_v7, %v743_v58  ;;  %955 = vmatmul.f32.gmra.mxu3 %v842_v6  ;;  %1001 = vmatmul.f32.gmra.mxu1 %v842_v6 }
 0x2cc   :  { %v791_v10 = vadd.f32 %v790_v9, %v768_v8 }
 0x2ce   :  { %v841_v11 = vmax.f32 %v791_v10, 0.0 }
 0x2d0   :  { %932 = vmatmul.f32.gmra.mxu2 %v841_v11  ;;  %978 = vmatmul.f32.gmra.mxu0 %v841_v11 }
 0x33f   :  { %v999_v31 = vpop.f32.mrf.mxu1 }
 0x345   :  { %v976_v32 = vpop.f32.mrf.mxu0  ;;  %v953_v37 = vpop.f32.mrf.mxu3 }
 0x346   :  { %v977_v33 = vadd.f32 %v976_v32, %v910_v30 }
 0x347   :  { %v1002_v43 = vpop.f32.mrf.mxu1 }
 0x348   :  { %v1000_v34 = vadd.f32 %v999_v31, %v977_v33 }
 0x34a   :  { %v1006_v36 = vmax.f32 %v1000_v34, 0.0 }
 0x34b   :  { %v930_v38 = vpop.f32.mrf.mxu2 }
 0x34c   :  { %v931_v39 = vadd.f32 %v930_v38, %v909_v35  ;;  %1084 = vmatmul.f32.vlgmr.msrb.gmra.mxu3 %v1006_v36 }
 0x34d   :  { %v979_v40 = vpop.f32.mrf.mxu0  ;;  %v956_v49 = vpop.f32.mrf.mxu3 }
 0x34e   :  { %v954_v41 = vadd.f32 %v953_v37, %v931_v39  ;;  %v980_v42 = vadd.f32 %v979_v40, %v910_v30 }
 0x350   :  { %v1005_v44 = vmax.f32 %v954_v41, 0.0  ;;  %v1003_v45 = vadd.f32 %v1002_v43, %v980_v42 }
 0x352   :  { %1061 = vmatmul.f32.vlgmr.msrb.gmra.mxu2 %v1005_v44  ;;  %v1008_v46 = vmax.f32 %v1003_v45, 0.0 }
 0x353   :  { %v933_v47 = vpop.f32.mrf.mxu2 }
 0x354   :  { %v934_v48 = vadd.f32 %v933_v47, %v909_v35  ;;  %1087 = vmatmul.f32.gmra.mxu3 %v1008_v46 }
 0x356   :  { %v957_v50 = vadd.f32 %v956_v49, %v934_v48 }
 0x358   :  { %v1007_v51 = vmax.f32 %v957_v50, 0.0 }
 0x35a   :  { %1064 = vmatmul.f32.gmra.mxu2 %v1007_v51 }
 0x3cf   :  { %v1085_v53 = vpop.f32.mrf.mxu3 }
 0x3d5   :  { %v1062_v54 = vpop.f32.mrf.mxu2 }
 0x3d6   :  { %v1063_v55 = vadd.f32 %v1125_v52, %v1062_v54 }
 0x3d7   :  { %v1088_v59 = vpop.f32.mrf.mxu3 }
 0x3d8   :  { %v1086_v56 = vadd.f32 %v1085_v53, %v1063_v55 }
 0x3da   :  { %1091 = vst [vmem:[#allocation8] sm:$0xff] %v1086_v56 }
 0x3dd   :  { %v1065_v57 = vpop.f32.mrf.mxu2 }
 0x3de   :  { %v1066_v58 = vadd.f32 %v1125_v52, %v1065_v57 }
 0x3e0   :  { %v1089_v60 = vadd.f32 %v1088_v59, %v1066_v58 }
 0x3e2   :  { %1092 = vst [vmem:[#allocation8 + $0x8] sm:$0xff] %v1089_v60 }
 0x3e3   :  { %1105 = dma.vmem_to_hbm [thread:$0]  %s1098_s23, 256, %s1100_s2, [#allocation4], %s1234_s26, %s1234_s26, %s1235_s14  }
 0x3e4   :  { %1226 = dma.done.wait [#allocation4], 256  }
 0x3e5   :  { %1227 = vsyncadd [#allocation4], 4294967040 }
 0x3e6   :  { %1110 = vsyncpa [#allocation3], 1 }
 0x3e7   :  { %1111 = vsyncpa [#allocation6], 1 }
 0x3e8   :  { %1112 = vsyncpa [#allocation4], 1 }

</bundles_post_ra>
